<compile_context>
chip_gen: v6e
topology: v6e:2x2x1
jax: 0.10.0
libtpu: 0.0.40
codegen_flags: <defaults>
</compile_context>

<pallas_src>
import functools

import jax
import jax.numpy as jnp
from jax import lax
from jax.experimental import pallas as pl
from jax.experimental.pallas import tpu as pltpu


# ----------------------------------------------------------------------------
# Fused kernel: QKV projection + per-head causal attention + output projection
# (+ bias), for `batch_block` batch elements per grid step.
# ----------------------------------------------------------------------------
def _mha_fused_kernel(x_ref, wqkv_ref, wp_ref, bp_ref, o_ref, acc_ref, *,
                      num_heads, head_size, scale, batch_block):
    H, hs = num_heads, head_size
    T = x_ref.shape[1]
    C = x_ref.shape[2]
    in_dtype = x_ref.dtype

    # Additive causal-mask bias, built once and shared across heads & batch.
    # Finite value -> no inf-inf NaN hazard (diagonal is always unmasked, so
    # the row max is finite).
    row = lax.broadcasted_iota(jnp.int32, (T, T), 0)
    col = lax.broadcasted_iota(jnp.int32, (T, T), 1)
    mask_bias = jnp.where(col <= row, jnp.float32(0.0), jnp.float32(-1e30))

    # Hoist the bias broadcast out of both loops (JAX does not CSE broadcasts).
    bias_f32 = jnp.broadcast_to(bp_ref[...].astype(jnp.float32), (T, C))

    scale_dt = jnp.asarray(scale, dtype=in_dtype)

    for bi in range(batch_block):                 # static unroll; small
        x = x_ref[bi]                             # (T, C)

        # One lane-dense MXU matmul for Q, K, V of every head; keep the MXU
        # operands in the input dtype (bf16 fast path), accumulate in f32.
        qkv = jnp.dot(x, wqkv_ref[...], preferred_element_type=jnp.float32)
        qkv = qkv.astype(in_dtype)                # (T, 3C)

        # Out-proj bias is the accumulator's initial value.
        acc_ref[...] = bias_f32

        for h in range(H):                        # static unroll; H is small
            q = qkv[:, h * hs:(h + 1) * hs] * scale_dt            # scale folded into q
            k = qkv[:, C + h * hs:C + (h + 1) * hs]
            v = qkv[:, 2 * C + h * hs:2 * C + (h + 1) * hs]

            # Contract last dims directly (q @ k.T without an explicit
            # transpose through the XLU).
            s = lax.dot_general(q, k, (((1,), (1,)), ((), ())),
                                preferred_element_type=jnp.float32)  # (T, T)
            s = s + mask_bias
            s = s - jnp.max(s, axis=-1, keepdims=True)
            p = jnp.exp(s)
            # Reciprocal on the EUP slot instead of a VPU divide over (T, T).
            inv = pl.reciprocal(jnp.sum(p, axis=-1, keepdims=True), approx=True)
            p = (p * inv).astype(in_dtype)
            # TODO(synk): attention dropout skipped (eval-mode identity).

            head_out = jnp.dot(p, v, preferred_element_type=jnp.float32)  # (T, hs)

            # Accumulate this head's slice of the output projection directly:
            # concat(heads) @ Wp == sum_h head_h @ Wp[h*hs:(h+1)*hs, :].
            acc_ref[...] += jnp.dot(head_out.astype(in_dtype),
                                    wp_ref[h * hs:(h + 1) * hs, :],
                                    preferred_element_type=jnp.float32)

        # TODO(synk): output dropout skipped (eval-mode identity).
        o_ref[bi] = acc_ref[...].astype(o_ref.dtype)      # lane-dense (T, C) store


def _build_call(B, T, C, dtype, *, num_heads, head_size, scale, batch_block,
                vmem_limit_bytes, single_buffer_weights):
    kernel = functools.partial(_mha_fused_kernel, num_heads=num_heads,
                               head_size=head_size, scale=scale,
                               batch_block=batch_block)

    def wspec(shape):
        # Constant-index weights: single buffer saves VMEM + redundant DMAs.
        n = len(shape)
        if single_buffer_weights:
            return pl.BlockSpec(shape, lambda b: (0,) * n,
                                pipeline_mode=pl.Buffered(1))
        return pl.BlockSpec(shape, lambda b: (0,) * n)

    return pl.pallas_call(
        kernel,
        out_shape=jax.ShapeDtypeStruct((B, T, C), dtype),
        grid_spec=pltpu.PrefetchScalarGridSpec(
            num_scalar_prefetch=0,
            grid=(B // batch_block,),
            in_specs=[
                pl.BlockSpec((batch_block, T, C), lambda b: (b, 0, 0)),  # x
                wspec((C, 3 * C)),                                       # W_qkv
                wspec((C, C)),                                           # W_proj
                wspec((1, C)),                                           # b_proj
            ],
            out_specs=pl.BlockSpec((batch_block, T, C), lambda b: (b, 0, 0)),
            scratch_shapes=[pltpu.VMEM((T, C), jnp.float32)],            # out-proj acc
        ),
        compiler_params=pltpu.CompilerParams(
            dimension_semantics=("parallel",),
            vmem_limit_bytes=vmem_limit_bytes),
    )


def multi_head_attention(x, w_qkv, wp, bp, *, num_heads, batch_block=None):
    """x: (B, T, C); w_qkv: (C, 3C) [Q|K|V, head-major cols]; wp: (C, C); bp: (1, C)."""
    B, T, C = x.shape
    assert C % num_heads == 0
    head_size = C // num_heads
    # The module scales by n_embed**-0.5 (full C), NOT head_size**-0.5.
    scale = float(C) ** (-0.5)

    itemsize = jnp.dtype(x.dtype).itemsize

    if batch_block is None:
        # Fold the whole (small) batch into one grid step; per-grid-step
        # overhead dominates at toy shapes. Fall back to per-batch blocks
        # when the per-step working set gets large.
        per_batch = (T * C * itemsize          # x
                     + T * 3 * C * 4           # qkv (f32 before downcast)
                     + T * T * 4               # scores
                     + T * C * 4)              # accumulator
        batch_block = B if B * per_batch <= (2 << 20) else 1
    if B % batch_block != 0:
        batch_block = 1

    # Size the scoped-VMEM limit from the actual working set (+headroom),
    # clamped to stay within physical VMEM on every current chip.
    weights_bytes = (C * 3 * C + C * C + C) * itemsize * 2      # worst-case dbl-buffer
    io_bytes = 2 * (2 * batch_block * T * C * itemsize)         # x + out, dbl-buffered
    work_bytes = (T * 3 * C + 2 * T * T + T * C) * 4            # qkv, scores+mask, acc
    vmem_limit = int(min(max(2 * (weights_bytes + io_bytes + work_bytes), 8 << 20),
                         64 << 20))

    common = dict(num_heads=num_heads, head_size=head_size, scale=scale,
                  batch_block=batch_block, vmem_limit_bytes=vmem_limit)
    try:
        return _build_call(B, T, C, x.dtype, single_buffer_weights=True,
                           **common)(x, w_qkv, wp, bp)
    except Exception:
        # pipeline_mode=pl.Buffered(1) unsupported on this jax version ->
        # fall back to default double-buffered weight specs.
        return _build_call(B, T, C, x.dtype, single_buffer_weights=False,
                           **common)(x, w_qkv, wp, bp)


# ----------------------------------------------------------------------------
# Pure-JAX reference (mirrors the PyTorch forward, eval mode).
# ----------------------------------------------------------------------------
def reference(x, wq, wk, wv, wp, bp):
    B, T, C = x.shape
    scale = float(C) ** (-0.5)
    mask = jnp.tril(jnp.ones((T, T), dtype=bool))
    outs = []
    for h in range(wq.shape[0]):
        q = x @ wq[h]
        k = x @ wk[h]
        v = x @ wv[h]
        wei = (q @ jnp.swapaxes(k, -2, -1)) * scale
        wei = jnp.where(mask, wei, -jnp.inf)
        wei = jax.nn.softmax(wei, axis=-1)
        outs.append(wei @ v)
    cat = jnp.concatenate(outs, axis=-1)
    return cat @ wp + bp


if __name__ == "__main__":
    # Small shapes consistent with the module.
    B = 2             # batch
    T = 8             # sequence length (== block_size)
    n_embed = 32
    num_heads = 4
    head_size = n_embed // num_heads   # 8

    key = jax.random.PRNGKey(0)
    kx, kq, kk, kv, kp, kb = jax.random.split(key, 6)

    x = jax.random.normal(kx, (B, T, n_embed), dtype=jnp.float32)

    # Per-head weights (pre-transposed so y = x @ W), packed into the fused
    # (C, 3*C) layout the kernel expects (head-major column order).
    wq = jax.random.normal(kq, (num_heads, n_embed, head_size), jnp.float32) * 0.1
    wk = jax.random.normal(kk, (num_heads, n_embed, head_size), jnp.float32) * 0.1
    wv = jax.random.normal(kv, (num_heads, n_embed, head_size), jnp.float32) * 0.1
    wp = jax.random.normal(kp, (n_embed, n_embed), jnp.float32) * 0.1
    bp = jax.random.normal(kb, (1, n_embed), jnp.float32) * 0.1

    def pack(w):  # (H, C, hs) -> (C, H*hs), head-major columns
        return jnp.transpose(w, (1, 0, 2)).reshape(n_embed, num_heads * head_size)

    w_qkv = jnp.concatenate([pack(wq), pack(wk), pack(wv)], axis=-1)  # (C, 3C)

    out = multi_head_attention(x, w_qkv, wp, bp, num_heads=num_heads)
    out = jax.block_until_ready(out)

    ref = reference(x, wq, wk, wv, wp, bp)
    assert out.shape == (B, T, n_embed)
    assert jnp.allclose(out, ref, atol=1e-2, rtol=1e-2), "mismatch vs reference"

    print("KERNEL_OK")
</pallas_src>

<mosaic_0001>
module attributes {stable_mosaic.version = 11 : i64} {
  func.func @_mha_fused_kernel(%arg0: i32, %arg1: memref<2x8x32xf32, #tpu.memory_space<vmem>>, %arg2: memref<32x96xf32, #tpu.memory_space<vmem>>, %arg3: memref<32x32xf32, #tpu.memory_space<vmem>>, %arg4: memref<1x32xf32, #tpu.memory_space<vmem>>, %arg5: memref<2x8x32xf32, #tpu.memory_space<vmem>>, %arg6: memref<8x32xf32, #tpu.memory_space<vmem>>) attributes {dimension_semantics = [#tpu.dimension_semantics<parallel>], iteration_bounds = array<i64: 1>, scalar_prefetch = 0 : i64, scratch_operands = 1 : i64, tpu.core_type = #tpu.core_type<tc>, window_params = [{transform_indices = @transform_0, window_bounds = array<i64: 2, 8, 32>}, {pipeline_mode = #tpu.pipeline_mode<synchronous>, transform_indices = @transform_1, window_bounds = array<i64: 32, 96>}, {pipeline_mode = #tpu.pipeline_mode<synchronous>, transform_indices = @transform_2, window_bounds = array<i64: 32, 32>}, {pipeline_mode = #tpu.pipeline_mode<synchronous>, transform_indices = @transform_3, window_bounds = array<i64: 1, 32>}, {transform_indices = @transform_4, window_bounds = array<i64: 2, 8, 32>}]} {
    %0 = tpu.iota {dimensions = array<i32: 0>} : vector<8x8xi32>
    %1 = tpu.iota {dimensions = array<i32: 1>} : vector<8x8xi32>
    %2 = arith.cmpi sle, %1, %0 : vector<8x8xi32>
    %cst = arith.constant 0.000000e+00 : f32
    %cst_0 = arith.constant -1.000000e+30 : f32
    %3 = vector.broadcast %cst : f32 to vector<8x8xf32>
    %4 = vector.broadcast %cst_0 : f32 to vector<8x8xf32>
    %5 = arith.select %2, %3, %4 : vector<8x8xi1>, vector<8x8xf32>
    %c0 = arith.constant 0 : index
    %c0_1 = arith.constant 0 : index
    %6 = vector.load %arg4[%c0, %c0_1] : memref<1x32xf32, #tpu.memory_space<vmem>>, vector<1x32xf32>
    %7 = vector.shape_cast %6 : vector<1x32xf32> to vector<1x32xf32>
    %8 = vector.broadcast %7 : vector<1x32xf32> to vector<8x32xf32>
    %c0_2 = arith.constant 0 : index
    %c0_3 = arith.constant 0 : index
    %c0_4 = arith.constant 0 : index
    %9 = vector.load %arg1[%c0_2, %c0_3, %c0_4] : memref<2x8x32xf32, #tpu.memory_space<vmem>>, vector<1x8x32xf32>
    %10 = vector.shape_cast %9 : vector<1x8x32xf32> to vector<8x32xf32>
    %c0_5 = arith.constant 0 : index
    %c0_6 = arith.constant 0 : index
    %11 = vector.load %arg2[%c0_5, %c0_6] : memref<32x96xf32, #tpu.memory_space<vmem>>, vector<32x96xf32>
    %cst_7 = arith.constant dense<0.000000e+00> : vector<8x96xf32>
    %12 = tpu.matmul %10, %11, %cst_7 {dimension_numbers = #tpu.dot_dimension_numbers<[1], [0], [0], [1], [0, 0, 1, 1], [], []>} : vector<8x32xf32>, vector<32x96xf32>, vector<8x96xf32> -> vector<8x96xf32>
    %c0_8 = arith.constant 0 : index
    %c0_9 = arith.constant 0 : index
    %13 = vector.load %arg6[%c0_8, %c0_9] : memref<8x32xf32, #tpu.memory_space<vmem>>, vector<8x32xf32>
    tpu.vector_store %arg6[%c0_8, %c0_9], %8 {strides = array<i32>} : memref<8x32xf32, #tpu.memory_space<vmem>>, vector<8x32xf32>,
    %14 = vector.extract_strided_slice %12 {offsets = [0, 0], sizes = [8, 8], strides = [1, 1]} : vector<8x96xf32> to vector<8x8xf32>
    %cst_10 = arith.constant 0.176776692 : f32
    %15 = vector.broadcast %cst_10 : f32 to vector<8x8xf32>
    %16 = arith.mulf %14, %15 : vector<8x8xf32>
    %17 = vector.extract_strided_slice %12 {offsets = [0, 32], sizes = [8, 8], strides = [1, 1]} : vector<8x96xf32> to vector<8x8xf32>
    %18 = vector.extract_strided_slice %12 {offsets = [0, 64], sizes = [8, 8], strides = [1, 1]} : vector<8x96xf32> to vector<8x8xf32>
    %cst_11 = arith.constant dense<0.000000e+00> : vector<8x8xf32>
    %19 = tpu.matmul %16, %17, %cst_11 {dimension_numbers = #tpu.dot_dimension_numbers<[1], [1], [0], [0], [0, 0, 1, 0], [], []>} : vector<8x8xf32>, vector<8x8xf32>, vector<8x8xf32> -> vector<8x8xf32>
    %20 = arith.addf %19, %5 : vector<8x8xf32>
    %cst_12 = arith.constant dense<0xFF800000> : vector<8xf32>
    %21 = vector.multi_reduction <maximumf>, %20, %cst_12 [1] : vector<8x8xf32> to vector<8xf32>
    %22 = vector.shape_cast %21 : vector<8xf32> to vector<8x1xf32>
    %23 = vector.broadcast %22 : vector<8x1xf32> to vector<8x8xf32>
    %24 = arith.subf %20, %23 : vector<8x8xf32>
    %25 = math.exp %24 : vector<8x8xf32>
    %cst_13 = arith.constant dense<0.000000e+00> : vector<8xf32>
    %26 = vector.multi_reduction <add>, %25, %cst_13 [1] : vector<8x8xf32> to vector<8xf32>
    %27 = vector.shape_cast %26 : vector<8xf32> to vector<8x1xf32>
    %28 = tpu.reciprocal %27 {approx = true} : vector<8x1xf32> -> vector<8x1xf32>
    %29 = vector.broadcast %28 : vector<8x1xf32> to vector<8x8xf32>
    %30 = arith.mulf %25, %29 : vector<8x8xf32>
    %cst_14 = arith.constant dense<0.000000e+00> : vector<8x8xf32>
    %31 = tpu.matmul %30, %18, %cst_14 {dimension_numbers = #tpu.dot_dimension_numbers<[1], [0], [0], [1], [0, 0, 1, 1], [], []>} : vector<8x8xf32>, vector<8x8xf32>, vector<8x8xf32> -> vector<8x8xf32>
    %c0_15 = arith.constant 0 : index
    %c0_16 = arith.constant 0 : index
    %32 = vector.load %arg6[%c0_15, %c0_16] : memref<8x32xf32, #tpu.memory_space<vmem>>, vector<8x32xf32>
    %c0_17 = arith.constant 0 : index
    %c0_18 = arith.constant 0 : index
    %33 = vector.load %arg3[%c0_17, %c0_18] : memref<32x32xf32, #tpu.memory_space<vmem>>, vector<8x32xf32>
    %cst_19 = arith.constant dense<0.000000e+00> : vector<8x32xf32>
    %34 = tpu.matmul %31, %33, %cst_19 {dimension_numbers = #tpu.dot_dimension_numbers<[1], [0], [0], [1], [0, 0, 1, 1], [], []>} : vector<8x8xf32>, vector<8x32xf32>, vector<8x32xf32> -> vector<8x32xf32>
    %35 = arith.addf %32, %34 : vector<8x32xf32>
    %c0_20 = arith.constant 0 : index
    %c0_21 = arith.constant 0 : index
    %36 = vector.load %arg6[%c0_20, %c0_21] : memref<8x32xf32, #tpu.memory_space<vmem>>, vector<8x32xf32>
    tpu.vector_store %arg6[%c0_20, %c0_21], %35 {strides = array<i32>} : memref<8x32xf32, #tpu.memory_space<vmem>>, vector<8x32xf32>,
    %37 = vector.extract_strided_slice %12 {offsets = [0, 8], sizes = [8, 8], strides = [1, 1]} : vector<8x96xf32> to vector<8x8xf32>
    %cst_22 = arith.constant 0.176776692 : f32
    %38 = vector.broadcast %cst_22 : f32 to vector<8x8xf32>
    %39 = arith.mulf %37, %38 : vector<8x8xf32>
    %40 = vector.extract_strided_slice %12 {offsets = [0, 40], sizes = [8, 8], strides = [1, 1]} : vector<8x96xf32> to vector<8x8xf32>
    %41 = vector.extract_strided_slice %12 {offsets = [0, 72], sizes = [8, 8], strides = [1, 1]} : vector<8x96xf32> to vector<8x8xf32>
    %cst_23 = arith.constant dense<0.000000e+00> : vector<8x8xf32>
    %42 = tpu.matmul %39, %40, %cst_23 {dimension_numbers = #tpu.dot_dimension_numbers<[1], [1], [0], [0], [0, 0, 1, 0], [], []>} : vector<8x8xf32>, vector<8x8xf32>, vector<8x8xf32> -> vector<8x8xf32>
    %43 = arith.addf %42, %5 : vector<8x8xf32>
    %cst_24 = arith.constant dense<0xFF800000> : vector<8xf32>
    %44 = vector.multi_reduction <maximumf>, %43, %cst_24 [1] : vector<8x8xf32> to vector<8xf32>
    %45 = vector.shape_cast %44 : vector<8xf32> to vector<8x1xf32>
    %46 = vector.broadcast %45 : vector<8x1xf32> to vector<8x8xf32>
    %47 = arith.subf %43, %46 : vector<8x8xf32>
    %48 = math.exp %47 : vector<8x8xf32>
    %cst_25 = arith.constant dense<0.000000e+00> : vector<8xf32>
    %49 = vector.multi_reduction <add>, %48, %cst_25 [1] : vector<8x8xf32> to vector<8xf32>
    %50 = vector.shape_cast %49 : vector<8xf32> to vector<8x1xf32>
    %51 = tpu.reciprocal %50 {approx = true} : vector<8x1xf32> -> vector<8x1xf32>
    %52 = vector.broadcast %51 : vector<8x1xf32> to vector<8x8xf32>
    %53 = arith.mulf %48, %52 : vector<8x8xf32>
    %cst_26 = arith.constant dense<0.000000e+00> : vector<8x8xf32>
    %54 = tpu.matmul %53, %41, %cst_26 {dimension_numbers = #tpu.dot_dimension_numbers<[1], [0], [0], [1], [0, 0, 1, 1], [], []>} : vector<8x8xf32>, vector<8x8xf32>, vector<8x8xf32> -> vector<8x8xf32>
    %c0_27 = arith.constant 0 : index
    %c0_28 = arith.constant 0 : index
    %55 = vector.load %arg6[%c0_27, %c0_28] : memref<8x32xf32, #tpu.memory_space<vmem>>, vector<8x32xf32>
    %c8 = arith.constant 8 : index
    %c0_29 = arith.constant 0 : index
    %56 = vector.load %arg3[%c8, %c0_29] : memref<32x32xf32, #tpu.memory_space<vmem>>, vector<8x32xf32>
    %cst_30 = arith.constant dense<0.000000e+00> : vector<8x32xf32>
    %57 = tpu.matmul %54, %56, %cst_30 {dimension_numbers = #tpu.dot_dimension_numbers<[1], [0], [0], [1], [0, 0, 1, 1], [], []>} : vector<8x8xf32>, vector<8x32xf32>, vector<8x32xf32> -> vector<8x32xf32>
    %58 = arith.addf %55, %57 : vector<8x32xf32>
    %c0_31 = arith.constant 0 : index
    %c0_32 = arith.constant 0 : index
    %59 = vector.load %arg6[%c0_31, %c0_32] : memref<8x32xf32, #tpu.memory_space<vmem>>, vector<8x32xf32>
    tpu.vector_store %arg6[%c0_31, %c0_32], %58 {strides = array<i32>} : memref<8x32xf32, #tpu.memory_space<vmem>>, vector<8x32xf32>,
    %60 = vector.extract_strided_slice %12 {offsets = [0, 16], sizes = [8, 8], strides = [1, 1]} : vector<8x96xf32> to vector<8x8xf32>
    %cst_33 = arith.constant 0.176776692 : f32
    %61 = vector.broadcast %cst_33 : f32 to vector<8x8xf32>
    %62 = arith.mulf %60, %61 : vector<8x8xf32>
    %63 = vector.extract_strided_slice %12 {offsets = [0, 48], sizes = [8, 8], strides = [1, 1]} : vector<8x96xf32> to vector<8x8xf32>
    %64 = vector.extract_strided_slice %12 {offsets = [0, 80], sizes = [8, 8], strides = [1, 1]} : vector<8x96xf32> to vector<8x8xf32>
    %cst_34 = arith.constant dense<0.000000e+00> : vector<8x8xf32>
    %65 = tpu.matmul %62, %63, %cst_34 {dimension_numbers = #tpu.dot_dimension_numbers<[1], [1], [0], [0], [0, 0, 1, 0], [], []>} : vector<8x8xf32>, vector<8x8xf32>, vector<8x8xf32> -> vector<8x8xf32>
    %66 = arith.addf %65, %5 : vector<8x8xf32>
    %cst_35 = arith.constant dense<0xFF800000> : vector<8xf32>
    %67 = vector.multi_reduction <maximumf>, %66, %cst_35 [1] : vector<8x8xf32> to vector<8xf32>
    %68 = vector.shape_cast %67 : vector<8xf32> to vector<8x1xf32>
    %69 = vector.broadcast %68 : vector<8x1xf32> to vector<8x8xf32>
    %70 = arith.subf %66, %69 : vector<8x8xf32>
    %71 = math.exp %70 : vector<8x8xf32>
    %cst_36 = arith.constant dense<0.000000e+00> : vector<8xf32>
    %72 = vector.multi_reduction <add>, %71, %cst_36 [1] : vector<8x8xf32> to vector<8xf32>
    %73 = vector.shape_cast %72 : vector<8xf32> to vector<8x1xf32>
    %74 = tpu.reciprocal %73 {approx = true} : vector<8x1xf32> -> vector<8x1xf32>
    %75 = vector.broadcast %74 : vector<8x1xf32> to vector<8x8xf32>
    %76 = arith.mulf %71, %75 : vector<8x8xf32>
    %cst_37 = arith.constant dense<0.000000e+00> : vector<8x8xf32>
    %77 = tpu.matmul %76, %64, %cst_37 {dimension_numbers = #tpu.dot_dimension_numbers<[1], [0], [0], [1], [0, 0, 1, 1], [], []>} : vector<8x8xf32>, vector<8x8xf32>, vector<8x8xf32> -> vector<8x8xf32>
    %c0_38 = arith.constant 0 : index
    %c0_39 = arith.constant 0 : index
    %78 = vector.load %arg6[%c0_38, %c0_39] : memref<8x32xf32, #tpu.memory_space<vmem>>, vector<8x32xf32>
    %c16 = arith.constant 16 : index
    %c0_40 = arith.constant 0 : index
    %79 = vector.load %arg3[%c16, %c0_40] : memref<32x32xf32, #tpu.memory_space<vmem>>, vector<8x32xf32>
    %cst_41 = arith.constant dense<0.000000e+00> : vector<8x32xf32>
    %80 = tpu.matmul %77, %79, %cst_41 {dimension_numbers = #tpu.dot_dimension_numbers<[1], [0], [0], [1], [0, 0, 1, 1], [], []>} : vector<8x8xf32>, vector<8x32xf32>, vector<8x32xf32> -> vector<8x32xf32>
    %81 = arith.addf %78, %80 : vector<8x32xf32>
    %c0_42 = arith.constant 0 : index
    %c0_43 = arith.constant 0 : index
    %82 = vector.load %arg6[%c0_42, %c0_43] : memref<8x32xf32, #tpu.memory_space<vmem>>, vector<8x32xf32>
    tpu.vector_store %arg6[%c0_42, %c0_43], %81 {strides = array<i32>} : memref<8x32xf32, #tpu.memory_space<vmem>>, vector<8x32xf32>,
    %83 = vector.extract_strided_slice %12 {offsets = [0, 24], sizes = [8, 8], strides = [1, 1]} : vector<8x96xf32> to vector<8x8xf32>
    %cst_44 = arith.constant 0.176776692 : f32
    %84 = vector.broadcast %cst_44 : f32 to vector<8x8xf32>
    %85 = arith.mulf %83, %84 : vector<8x8xf32>
    %86 = vector.extract_strided_slice %12 {offsets = [0, 56], sizes = [8, 8], strides = [1, 1]} : vector<8x96xf32> to vector<8x8xf32>
    %87 = vector.extract_strided_slice %12 {offsets = [0, 88], sizes = [8, 8], strides = [1, 1]} : vector<8x96xf32> to vector<8x8xf32>
    %cst_45 = arith.constant dense<0.000000e+00> : vector<8x8xf32>
    %88 = tpu.matmul %85, %86, %cst_45 {dimension_numbers = #tpu.dot_dimension_numbers<[1], [1], [0], [0], [0, 0, 1, 0], [], []>} : vector<8x8xf32>, vector<8x8xf32>, vector<8x8xf32> -> vector<8x8xf32>
    %89 = arith.addf %88, %5 : vector<8x8xf32>
    %cst_46 = arith.constant dense<0xFF800000> : vector<8xf32>
    %90 = vector.multi_reduction <maximumf>, %89, %cst_46 [1] : vector<8x8xf32> to vector<8xf32>
    %91 = vector.shape_cast %90 : vector<8xf32> to vector<8x1xf32>
    %92 = vector.broadcast %91 : vector<8x1xf32> to vector<8x8xf32>
    %93 = arith.subf %89, %92 : vector<8x8xf32>
    %94 = math.exp %93 : vector<8x8xf32>
    %cst_47 = arith.constant dense<0.000000e+00> : vector<8xf32>
    %95 = vector.multi_reduction <add>, %94, %cst_47 [1] : vector<8x8xf32> to vector<8xf32>
    %96 = vector.shape_cast %95 : vector<8xf32> to vector<8x1xf32>
    %97 = tpu.reciprocal %96 {approx = true} : vector<8x1xf32> -> vector<8x1xf32>
    %98 = vector.broadcast %97 : vector<8x1xf32> to vector<8x8xf32>
    %99 = arith.mulf %94, %98 : vector<8x8xf32>
    %cst_48 = arith.constant dense<0.000000e+00> : vector<8x8xf32>
    %100 = tpu.matmul %99, %87, %cst_48 {dimension_numbers = #tpu.dot_dimension_numbers<[1], [0], [0], [1], [0, 0, 1, 1], [], []>} : vector<8x8xf32>, vector<8x8xf32>, vector<8x8xf32> -> vector<8x8xf32>
    %c0_49 = arith.constant 0 : index
    %c0_50 = arith.constant 0 : index
    %101 = vector.load %arg6[%c0_49, %c0_50] : memref<8x32xf32, #tpu.memory_space<vmem>>, vector<8x32xf32>
    %c24 = arith.constant 24 : index
    %c0_51 = arith.constant 0 : index
    %102 = vector.load %arg3[%c24, %c0_51] : memref<32x32xf32, #tpu.memory_space<vmem>>, vector<8x32xf32>
    %cst_52 = arith.constant dense<0.000000e+00> : vector<8x32xf32>
    %103 = tpu.matmul %100, %102, %cst_52 {dimension_numbers = #tpu.dot_dimension_numbers<[1], [0], [0], [1], [0, 0, 1, 1], [], []>} : vector<8x8xf32>, vector<8x32xf32>, vector<8x32xf32> -> vector<8x32xf32>
    %104 = arith.addf %101, %103 : vector<8x32xf32>
    %c0_53 = arith.constant 0 : index
    %c0_54 = arith.constant 0 : index
    %105 = vector.load %arg6[%c0_53, %c0_54] : memref<8x32xf32, #tpu.memory_space<vmem>>, vector<8x32xf32>
    tpu.vector_store %arg6[%c0_53, %c0_54], %104 {strides = array<i32>} : memref<8x32xf32, #tpu.memory_space<vmem>>, vector<8x32xf32>,
    %c0_55 = arith.constant 0 : index
    %c0_56 = arith.constant 0 : index
    %106 = vector.load %arg6[%c0_55, %c0_56] : memref<8x32xf32, #tpu.memory_space<vmem>>, vector<8x32xf32>
    %c0_57 = arith.constant 0 : index
    %c0_58 = arith.constant 0 : index
    %c0_59 = arith.constant 0 : index
    %107 = vector.load %arg5[%c0_57, %c0_58, %c0_59] : memref<2x8x32xf32, #tpu.memory_space<vmem>>, vector<1x8x32xf32>
    %108 = vector.shape_cast %107 : vector<1x8x32xf32> to vector<8x32xf32>
    %109 = vector.shape_cast %106 : vector<8x32xf32> to vector<1x8x32xf32>
    tpu.vector_store %arg5[%c0_57, %c0_58, %c0_59], %109 {strides = array<i32>} : memref<2x8x32xf32, #tpu.memory_space<vmem>>, vector<1x8x32xf32>,
    %c1 = arith.constant 1 : index
    %c0_60 = arith.constant 0 : index
    %c0_61 = arith.constant 0 : index
    %110 = vector.load %arg1[%c1, %c0_60, %c0_61] : memref<2x8x32xf32, #tpu.memory_space<vmem>>, vector<1x8x32xf32>
    %111 = vector.shape_cast %110 : vector<1x8x32xf32> to vector<8x32xf32>
    %c0_62 = arith.constant 0 : index
    %c0_63 = arith.constant 0 : index
    %112 = vector.load %arg2[%c0_62, %c0_63] : memref<32x96xf32, #tpu.memory_space<vmem>>, vector<32x96xf32>
    %cst_64 = arith.constant dense<0.000000e+00> : vector<8x96xf32>
    %113 = tpu.matmul %111, %112, %cst_64 {dimension_numbers = #tpu.dot_dimension_numbers<[1], [0], [0], [1], [0, 0, 1, 1], [], []>} : vector<8x32xf32>, vector<32x96xf32>, vector<8x96xf32> -> vector<8x96xf32>
    %c0_65 = arith.constant 0 : index
    %c0_66 = arith.constant 0 : index
    %114 = vector.load %arg6[%c0_65, %c0_66] : memref<8x32xf32, #tpu.memory_space<vmem>>, vector<8x32xf32>
    tpu.vector_store %arg6[%c0_65, %c0_66], %8 {strides = array<i32>} : memref<8x32xf32, #tpu.memory_space<vmem>>, vector<8x32xf32>,
    %115 = vector.extract_strided_slice %113 {offsets = [0, 0], sizes = [8, 8], strides = [1, 1]} : vector<8x96xf32> to vector<8x8xf32>
    %cst_67 = arith.constant 0.176776692 : f32
    %116 = vector.broadcast %cst_67 : f32 to vector<8x8xf32>
    %117 = arith.mulf %115, %116 : vector<8x8xf32>
    %118 = vector.extract_strided_slice %113 {offsets = [0, 32], sizes = [8, 8], strides = [1, 1]} : vector<8x96xf32> to vector<8x8xf32>
    %119 = vector.extract_strided_slice %113 {offsets = [0, 64], sizes = [8, 8], strides = [1, 1]} : vector<8x96xf32> to vector<8x8xf32>
    %cst_68 = arith.constant dense<0.000000e+00> : vector<8x8xf32>
    %120 = tpu.matmul %117, %118, %cst_68 {dimension_numbers = #tpu.dot_dimension_numbers<[1], [1], [0], [0], [0, 0, 1, 0], [], []>} : vector<8x8xf32>, vector<8x8xf32>, vector<8x8xf32> -> vector<8x8xf32>
    %121 = arith.addf %120, %5 : vector<8x8xf32>
    %cst_69 = arith.constant dense<0xFF800000> : vector<8xf32>
    %122 = vector.multi_reduction <maximumf>, %121, %cst_69 [1] : vector<8x8xf32> to vector<8xf32>
    %123 = vector.shape_cast %122 : vector<8xf32> to vector<8x1xf32>
    %124 = vector.broadcast %123 : vector<8x1xf32> to vector<8x8xf32>
    %125 = arith.subf %121, %124 : vector<8x8xf32>
    %126 = math.exp %125 : vector<8x8xf32>
    %cst_70 = arith.constant dense<0.000000e+00> : vector<8xf32>
    %127 = vector.multi_reduction <add>, %126, %cst_70 [1] : vector<8x8xf32> to vector<8xf32>
    %128 = vector.shape_cast %127 : vector<8xf32> to vector<8x1xf32>
    %129 = tpu.reciprocal %128 {approx = true} : vector<8x1xf32> -> vector<8x1xf32>
    %130 = vector.broadcast %129 : vector<8x1xf32> to vector<8x8xf32>
    %131 = arith.mulf %126, %130 : vector<8x8xf32>
    %cst_71 = arith.constant dense<0.000000e+00> : vector<8x8xf32>
    %132 = tpu.matmul %131, %119, %cst_71 {dimension_numbers = #tpu.dot_dimension_numbers<[1], [0], [0], [1], [0, 0, 1, 1], [], []>} : vector<8x8xf32>, vector<8x8xf32>, vector<8x8xf32> -> vector<8x8xf32>
    %c0_72 = arith.constant 0 : index
    %c0_73 = arith.constant 0 : index
    %133 = vector.load %arg6[%c0_72, %c0_73] : memref<8x32xf32, #tpu.memory_space<vmem>>, vector<8x32xf32>
    %c0_74 = arith.constant 0 : index
    %c0_75 = arith.constant 0 : index
    %134 = vector.load %arg3[%c0_74, %c0_75] : memref<32x32xf32, #tpu.memory_space<vmem>>, vector<8x32xf32>
    %cst_76 = arith.constant dense<0.000000e+00> : vector<8x32xf32>
    %135 = tpu.matmul %132, %134, %cst_76 {dimension_numbers = #tpu.dot_dimension_numbers<[1], [0], [0], [1], [0, 0, 1, 1], [], []>} : vector<8x8xf32>, vector<8x32xf32>, vector<8x32xf32> -> vector<8x32xf32>
    %136 = arith.addf %133, %135 : vector<8x32xf32>
    %c0_77 = arith.constant 0 : index
    %c0_78 = arith.constant 0 : index
    %137 = vector.load %arg6[%c0_77, %c0_78] : memref<8x32xf32, #tpu.memory_space<vmem>>, vector<8x32xf32>
    tpu.vector_store %arg6[%c0_77, %c0_78], %136 {strides = array<i32>} : memref<8x32xf32, #tpu.memory_space<vmem>>, vector<8x32xf32>,
    %138 = vector.extract_strided_slice %113 {offsets = [0, 8], sizes = [8, 8], strides = [1, 1]} : vector<8x96xf32> to vector<8x8xf32>
    %cst_79 = arith.constant 0.176776692 : f32
    %139 = vector.broadcast %cst_79 : f32 to vector<8x8xf32>
    %140 = arith.mulf %138, %139 : vector<8x8xf32>
    %141 = vector.extract_strided_slice %113 {offsets = [0, 40], sizes = [8, 8], strides = [1, 1]} : vector<8x96xf32> to vector<8x8xf32>
    %142 = vector.extract_strided_slice %113 {offsets = [0, 72], sizes = [8, 8], strides = [1, 1]} : vector<8x96xf32> to vector<8x8xf32>
    %cst_80 = arith.constant dense<0.000000e+00> : vector<8x8xf32>
    %143 = tpu.matmul %140, %141, %cst_80 {dimension_numbers = #tpu.dot_dimension_numbers<[1], [1], [0], [0], [0, 0, 1, 0], [], []>} : vector<8x8xf32>, vector<8x8xf32>, vector<8x8xf32> -> vector<8x8xf32>
    %144 = arith.addf %143, %5 : vector<8x8xf32>
    %cst_81 = arith.constant dense<0xFF800000> : vector<8xf32>
    %145 = vector.multi_reduction <maximumf>, %144, %cst_81 [1] : vector<8x8xf32> to vector<8xf32>
    %146 = vector.shape_cast %145 : vector<8xf32> to vector<8x1xf32>
    %147 = vector.broadcast %146 : vector<8x1xf32> to vector<8x8xf32>
    %148 = arith.subf %144, %147 : vector<8x8xf32>
    %149 = math.exp %148 : vector<8x8xf32>
    %cst_82 = arith.constant dense<0.000000e+00> : vector<8xf32>
    %150 = vector.multi_reduction <add>, %149, %cst_82 [1] : vector<8x8xf32> to vector<8xf32>
    %151 = vector.shape_cast %150 : vector<8xf32> to vector<8x1xf32>
    %152 = tpu.reciprocal %151 {approx = true} : vector<8x1xf32> -> vector<8x1xf32>
    %153 = vector.broadcast %152 : vector<8x1xf32> to vector<8x8xf32>
    %154 = arith.mulf %149, %153 : vector<8x8xf32>
    %cst_83 = arith.constant dense<0.000000e+00> : vector<8x8xf32>
    %155 = tpu.matmul %154, %142, %cst_83 {dimension_numbers = #tpu.dot_dimension_numbers<[1], [0], [0], [1], [0, 0, 1, 1], [], []>} : vector<8x8xf32>, vector<8x8xf32>, vector<8x8xf32> -> vector<8x8xf32>
    %c0_84 = arith.constant 0 : index
    %c0_85 = arith.constant 0 : index
    %156 = vector.load %arg6[%c0_84, %c0_85] : memref<8x32xf32, #tpu.memory_space<vmem>>, vector<8x32xf32>
    %c8_86 = arith.constant 8 : index
    %c0_87 = arith.constant 0 : index
    %157 = vector.load %arg3[%c8_86, %c0_87] : memref<32x32xf32, #tpu.memory_space<vmem>>, vector<8x32xf32>
    %cst_88 = arith.constant dense<0.000000e+00> : vector<8x32xf32>
    %158 = tpu.matmul %155, %157, %cst_88 {dimension_numbers = #tpu.dot_dimension_numbers<[1], [0], [0], [1], [0, 0, 1, 1], [], []>} : vector<8x8xf32>, vector<8x32xf32>, vector<8x32xf32> -> vector<8x32xf32>
    %159 = arith.addf %156, %158 : vector<8x32xf32>
    %c0_89 = arith.constant 0 : index
    %c0_90 = arith.constant 0 : index
    %160 = vector.load %arg6[%c0_89, %c0_90] : memref<8x32xf32, #tpu.memory_space<vmem>>, vector<8x32xf32>
    tpu.vector_store %arg6[%c0_89, %c0_90], %159 {strides = array<i32>} : memref<8x32xf32, #tpu.memory_space<vmem>>, vector<8x32xf32>,
    %161 = vector.extract_strided_slice %113 {offsets = [0, 16], sizes = [8, 8], strides = [1, 1]} : vector<8x96xf32> to vector<8x8xf32>
    %cst_91 = arith.constant 0.176776692 : f32
    %162 = vector.broadcast %cst_91 : f32 to vector<8x8xf32>
    %163 = arith.mulf %161, %162 : vector<8x8xf32>
    %164 = vector.extract_strided_slice %113 {offsets = [0, 48], sizes = [8, 8], strides = [1, 1]} : vector<8x96xf32> to vector<8x8xf32>
    %165 = vector.extract_strided_slice %113 {offsets = [0, 80], sizes = [8, 8], strides = [1, 1]} : vector<8x96xf32> to vector<8x8xf32>
    %cst_92 = arith.constant dense<0.000000e+00> : vector<8x8xf32>
    %166 = tpu.matmul %163, %164, %cst_92 {dimension_numbers = #tpu.dot_dimension_numbers<[1], [1], [0], [0], [0, 0, 1, 0], [], []>} : vector<8x8xf32>, vector<8x8xf32>, vector<8x8xf32> -> vector<8x8xf32>
    %167 = arith.addf %166, %5 : vector<8x8xf32>
    %cst_93 = arith.constant dense<0xFF800000> : vector<8xf32>
    %168 = vector.multi_reduction <maximumf>, %167, %cst_93 [1] : vector<8x8xf32> to vector<8xf32>
    %169 = vector.shape_cast %168 : vector<8xf32> to vector<8x1xf32>
    %170 = vector.broadcast %169 : vector<8x1xf32> to vector<8x8xf32>
    %171 = arith.subf %167, %170 : vector<8x8xf32>
    %172 = math.exp %171 : vector<8x8xf32>
    %cst_94 = arith.constant dense<0.000000e+00> : vector<8xf32>
    %173 = vector.multi_reduction <add>, %172, %cst_94 [1] : vector<8x8xf32> to vector<8xf32>
    %174 = vector.shape_cast %173 : vector<8xf32> to vector<8x1xf32>
    %175 = tpu.reciprocal %174 {approx = true} : vector<8x1xf32> -> vector<8x1xf32>
    %176 = vector.broadcast %175 : vector<8x1xf32> to vector<8x8xf32>
    %177 = arith.mulf %172, %176 : vector<8x8xf32>
    %cst_95 = arith.constant dense<0.000000e+00> : vector<8x8xf32>
    %178 = tpu.matmul %177, %165, %cst_95 {dimension_numbers = #tpu.dot_dimension_numbers<[1], [0], [0], [1], [0, 0, 1, 1], [], []>} : vector<8x8xf32>, vector<8x8xf32>, vector<8x8xf32> -> vector<8x8xf32>
    %c0_96 = arith.constant 0 : index
    %c0_97 = arith.constant 0 : index
    %179 = vector.load %arg6[%c0_96, %c0_97] : memref<8x32xf32, #tpu.memory_space<vmem>>, vector<8x32xf32>
    %c16_98 = arith.constant 16 : index
    %c0_99 = arith.constant 0 : index
    %180 = vector.load %arg3[%c16_98, %c0_99] : memref<32x32xf32, #tpu.memory_space<vmem>>, vector<8x32xf32>
    %cst_100 = arith.constant dense<0.000000e+00> : vector<8x32xf32>
    %181 = tpu.matmul %178, %180, %cst_100 {dimension_numbers = #tpu.dot_dimension_numbers<[1], [0], [0], [1], [0, 0, 1, 1], [], []>} : vector<8x8xf32>, vector<8x32xf32>, vector<8x32xf32> -> vector<8x32xf32>
    %182 = arith.addf %179, %181 : vector<8x32xf32>
    %c0_101 = arith.constant 0 : index
    %c0_102 = arith.constant 0 : index
    %183 = vector.load %arg6[%c0_101, %c0_102] : memref<8x32xf32, #tpu.memory_space<vmem>>, vector<8x32xf32>
    tpu.vector_store %arg6[%c0_101, %c0_102], %182 {strides = array<i32>} : memref<8x32xf32, #tpu.memory_space<vmem>>, vector<8x32xf32>,
    %184 = vector.extract_strided_slice %113 {offsets = [0, 24], sizes = [8, 8], strides = [1, 1]} : vector<8x96xf32> to vector<8x8xf32>
    %cst_103 = arith.constant 0.176776692 : f32
    %185 = vector.broadcast %cst_103 : f32 to vector<8x8xf32>
    %186 = arith.mulf %184, %185 : vector<8x8xf32>
    %187 = vector.extract_strided_slice %113 {offsets = [0, 56], sizes = [8, 8], strides = [1, 1]} : vector<8x96xf32> to vector<8x8xf32>
    %188 = vector.extract_strided_slice %113 {offsets = [0, 88], sizes = [8, 8], strides = [1, 1]} : vector<8x96xf32> to vector<8x8xf32>
    %cst_104 = arith.constant dense<0.000000e+00> : vector<8x8xf32>
    %189 = tpu.matmul %186, %187, %cst_104 {dimension_numbers = #tpu.dot_dimension_numbers<[1], [1], [0], [0], [0, 0, 1, 0], [], []>} : vector<8x8xf32>, vector<8x8xf32>, vector<8x8xf32> -> vector<8x8xf32>
    %190 = arith.addf %189, %5 : vector<8x8xf32>
    %cst_105 = arith.constant dense<0xFF800000> : vector<8xf32>
    %191 = vector.multi_reduction <maximumf>, %190, %cst_105 [1] : vector<8x8xf32> to vector<8xf32>
    %192 = vector.shape_cast %191 : vector<8xf32> to vector<8x1xf32>
    %193 = vector.broadcast %192 : vector<8x1xf32> to vector<8x8xf32>
    %194 = arith.subf %190, %193 : vector<8x8xf32>
    %195 = math.exp %194 : vector<8x8xf32>
    %cst_106 = arith.constant dense<0.000000e+00> : vector<8xf32>
    %196 = vector.multi_reduction <add>, %195, %cst_106 [1] : vector<8x8xf32> to vector<8xf32>
    %197 = vector.shape_cast %196 : vector<8xf32> to vector<8x1xf32>
    %198 = tpu.reciprocal %197 {approx = true} : vector<8x1xf32> -> vector<8x1xf32>
    %199 = vector.broadcast %198 : vector<8x1xf32> to vector<8x8xf32>
    %200 = arith.mulf %195, %199 : vector<8x8xf32>
    %cst_107 = arith.constant dense<0.000000e+00> : vector<8x8xf32>
    %201 = tpu.matmul %200, %188, %cst_107 {dimension_numbers = #tpu.dot_dimension_numbers<[1], [0], [0], [1], [0, 0, 1, 1], [], []>} : vector<8x8xf32>, vector<8x8xf32>, vector<8x8xf32> -> vector<8x8xf32>
    %c0_108 = arith.constant 0 : index
    %c0_109 = arith.constant 0 : index
    %202 = vector.load %arg6[%c0_108, %c0_109] : memref<8x32xf32, #tpu.memory_space<vmem>>, vector<8x32xf32>
    %c24_110 = arith.constant 24 : index
    %c0_111 = arith.constant 0 : index
    %203 = vector.load %arg3[%c24_110, %c0_111] : memref<32x32xf32, #tpu.memory_space<vmem>>, vector<8x32xf32>
    %cst_112 = arith.constant dense<0.000000e+00> : vector<8x32xf32>
    %204 = tpu.matmul %201, %203, %cst_112 {dimension_numbers = #tpu.dot_dimension_numbers<[1], [0], [0], [1], [0, 0, 1, 1], [], []>} : vector<8x8xf32>, vector<8x32xf32>, vector<8x32xf32> -> vector<8x32xf32>
    %205 = arith.addf %202, %204 : vector<8x32xf32>
    %c0_113 = arith.constant 0 : index
    %c0_114 = arith.constant 0 : index
    %206 = vector.load %arg6[%c0_113, %c0_114] : memref<8x32xf32, #tpu.memory_space<vmem>>, vector<8x32xf32>
    tpu.vector_store %arg6[%c0_113, %c0_114], %205 {strides = array<i32>} : memref<8x32xf32, #tpu.memory_space<vmem>>, vector<8x32xf32>,
    %c0_115 = arith.constant 0 : index
    %c0_116 = arith.constant 0 : index
    %207 = vector.load %arg6[%c0_115, %c0_116] : memref<8x32xf32, #tpu.memory_space<vmem>>, vector<8x32xf32>
    %c1_117 = arith.constant 1 : index
    %c0_118 = arith.constant 0 : index
    %c0_119 = arith.constant 0 : index
    %208 = vector.load %arg5[%c1_117, %c0_118, %c0_119] : memref<2x8x32xf32, #tpu.memory_space<vmem>>, vector<1x8x32xf32>
    %209 = vector.shape_cast %208 : vector<1x8x32xf32> to vector<8x32xf32>
    %210 = vector.shape_cast %207 : vector<8x32xf32> to vector<1x8x32xf32>
    tpu.vector_store %arg5[%c1_117, %c0_118, %c0_119], %210 {strides = array<i32>} : memref<2x8x32xf32, #tpu.memory_space<vmem>>, vector<1x8x32xf32>,
    return
  }
  func.func @transform_0(%arg0: i32) -> (i32, i32, i32) {
    %c0_i32 = arith.constant 0 : i32
    %c0_i32_0 = arith.constant 0 : i32
    %c0_i32_1 = arith.constant 0 : i32
    return %arg0, %c0_i32, %c0_i32_0 : i32, i32, i32
  }
  func.func @transform_1(%arg0: i32) -> (i32, i32) {
    %c0_i32 = arith.constant 0 : i32
    %c0_i32_0 = arith.constant 0 : i32
    %c0_i32_1 = arith.constant 0 : i32
    return %c0_i32, %c0_i32_0 : i32, i32
  }
  func.func @transform_2(%arg0: i32) -> (i32, i32) {
    %c0_i32 = arith.constant 0 : i32
    %c0_i32_0 = arith.constant 0 : i32
    %c0_i32_1 = arith.constant 0 : i32
    return %c0_i32, %c0_i32_0 : i32, i32
  }
  func.func @transform_3(%arg0: i32) -> (i32, i32) {
    %c0_i32 = arith.constant 0 : i32
    %c0_i32_0 = arith.constant 0 : i32
    %c0_i32_1 = arith.constant 0 : i32
    return %c0_i32, %c0_i32_0 : i32, i32
  }
  func.func @transform_4(%arg0: i32) -> (i32, i32, i32) {
    %c0_i32 = arith.constant 0 : i32
    %c0_i32_0 = arith.constant 0 : i32
    %c0_i32_1 = arith.constant 0 : i32
    return %arg0, %c0_i32, %c0_i32_0 : i32, i32, i32
  }
}

module attributes {stable_mosaic.version = 11 : i64} {
  func.func @_mha_fused_kernel(%arg0: i32, %arg1: memref<2x8x32xf32, #tpu.memory_space<vmem>>, %arg2: memref<32x96xf32, #tpu.memory_space<vmem>>, %arg3: memref<32x32xf32, #tpu.memory_space<vmem>>, %arg4: memref<1x32xf32, #tpu.memory_space<vmem>>, %arg5: memref<2x8x32xf32, #tpu.memory_space<vmem>>, %arg6: memref<8x32xf32, #tpu.memory_space<vmem>>) attributes {dimension_semantics = [#tpu.dimension_semantics<parallel>], iteration_bounds = array<i64: 1>, scalar_prefetch = 0 : i64, scratch_operands = 1 : i64, tpu.core_type = #tpu.core_type<tc>, window_params = [{transform_indices = @transform_0, window_bounds = array<i64: 2, 8, 32>}, {pipeline_mode = #tpu.pipeline_mode<synchronous>, transform_indices = @transform_1, window_bounds = array<i64: 32, 96>}, {pipeline_mode = #tpu.pipeline_mode<synchronous>, transform_indices = @transform_2, window_bounds = array<i64: 32, 32>}, {pipeline_mode = #tpu.pipeline_mode<synchronous>, transform_indices = @transform_3, window_bounds = array<i64: 1, 32>}, {transform_indices = @transform_4, window_bounds = array<i64: 2, 8, 32>}]} {
    %0 = tpu.iota {dimensions = array<i32: 0>} : vector<8x8xi32>
    %1 = tpu.iota {dimensions = array<i32: 1>} : vector<8x8xi32>
    %2 = arith.cmpi sle, %1, %0 : vector<8x8xi32>
    %cst = arith.constant 0.000000e+00 : f32
    %cst_0 = arith.constant -1.000000e+30 : f32
    %3 = vector.broadcast %cst : f32 to vector<8x8xf32>
    %4 = vector.broadcast %cst_0 : f32 to vector<8x8xf32>
    %5 = arith.select %2, %3, %4 : vector<8x8xi1>, vector<8x8xf32>
    %c0 = arith.constant 0 : index
    %c0_1 = arith.constant 0 : index
    %6 = vector.load %arg4[%c0, %c0_1] : memref<1x32xf32, #tpu.memory_space<vmem>>, vector<1x32xf32>
    %7 = vector.shape_cast %6 : vector<1x32xf32> to vector<1x32xf32>
    %8 = vector.broadcast %7 : vector<1x32xf32> to vector<8x32xf32>
    %c0_2 = arith.constant 0 : index
    %c0_3 = arith.constant 0 : index
    %c0_4 = arith.constant 0 : index
    %9 = vector.load %arg1[%c0_2, %c0_3, %c0_4] : memref<2x8x32xf32, #tpu.memory_space<vmem>>, vector<1x8x32xf32>
    %10 = vector.shape_cast %9 : vector<1x8x32xf32> to vector<8x32xf32>
    %c0_5 = arith.constant 0 : index
    %c0_6 = arith.constant 0 : index
    %11 = vector.load %arg2[%c0_5, %c0_6] : memref<32x96xf32, #tpu.memory_space<vmem>>, vector<32x96xf32>
    %cst_7 = arith.constant dense<0.000000e+00> : vector<8x96xf32>
    %12 = tpu.matmul %10, %11, %cst_7 {dimension_numbers = #tpu.dot_dimension_numbers<[1], [0], [0], [1], [0, 0, 1, 1], [], []>} : vector<8x32xf32>, vector<32x96xf32>, vector<8x96xf32> -> vector<8x96xf32>
    %c0_8 = arith.constant 0 : index
    %c0_9 = arith.constant 0 : index
    %13 = vector.load %arg6[%c0_8, %c0_9] : memref<8x32xf32, #tpu.memory_space<vmem>>, vector<8x32xf32>
    tpu.vector_store %arg6[%c0_8, %c0_9], %8 {strides = array<i32>} : memref<8x32xf32, #tpu.memory_space<vmem>>, vector<8x32xf32>,
    %14 = vector.extract_strided_slice %12 {offsets = [0, 0], sizes = [8, 8], strides = [1, 1]} : vector<8x96xf32> to vector<8x8xf32>
    %cst_10 = arith.constant 0.176776692 : f32
    %15 = vector.broadcast %cst_10 : f32 to vector<8x8xf32>
    %16 = arith.mulf %14, %15 : vector<8x8xf32>
    %17 = vector.extract_strided_slice %12 {offsets = [0, 32], sizes = [8, 8], strides = [1, 1]} : vector<8x96xf32> to vector<8x8xf32>
    %18 = vector.extract_strided_slice %12 {offsets = [0, 64], sizes = [8, 8], strides = [1, 1]} : vector<8x96xf32> to vector<8x8xf32>
    %cst_11 = arith.constant dense<0.000000e+00> : vector<8x8xf32>
    %19 = tpu.matmul %16, %17, %cst_11 {dimension_numbers = #tpu.dot_dimension_numbers<[1], [1], [0], [0], [0, 0, 1, 0], [], []>} : vector<8x8xf32>, vector<8x8xf32>, vector<8x8xf32> -> vector<8x8xf32>
    %20 = arith.addf %19, %5 : vector<8x8xf32>
    %cst_12 = arith.constant dense<0xFF800000> : vector<8xf32>
    %21 = vector.multi_reduction <maximumf>, %20, %cst_12 [1] : vector<8x8xf32> to vector<8xf32>
    %22 = vector.shape_cast %21 : vector<8xf32> to vector<8x1xf32>
    %23 = vector.broadcast %22 : vector<8x1xf32> to vector<8x8xf32>
    %24 = arith.subf %20, %23 : vector<8x8xf32>
    %25 = math.exp %24 : vector<8x8xf32>
    %cst_13 = arith.constant dense<0.000000e+00> : vector<8xf32>
    %26 = vector.multi_reduction <add>, %25, %cst_13 [1] : vector<8x8xf32> to vector<8xf32>
    %27 = vector.shape_cast %26 : vector<8xf32> to vector<8x1xf32>
    %28 = tpu.reciprocal %27 {approx = true} : vector<8x1xf32> -> vector<8x1xf32>
    %29 = vector.broadcast %28 : vector<8x1xf32> to vector<8x8xf32>
    %30 = arith.mulf %25, %29 : vector<8x8xf32>
    %cst_14 = arith.constant dense<0.000000e+00> : vector<8x8xf32>
    %31 = tpu.matmul %30, %18, %cst_14 {dimension_numbers = #tpu.dot_dimension_numbers<[1], [0], [0], [1], [0, 0, 1, 1], [], []>} : vector<8x8xf32>, vector<8x8xf32>, vector<8x8xf32> -> vector<8x8xf32>
    %c0_15 = arith.constant 0 : index
    %c0_16 = arith.constant 0 : index
    %32 = vector.load %arg6[%c0_15, %c0_16] : memref<8x32xf32, #tpu.memory_space<vmem>>, vector<8x32xf32>
    %c0_17 = arith.constant 0 : index
    %c0_18 = arith.constant 0 : index
    %33 = vector.load %arg3[%c0_17, %c0_18] : memref<32x32xf32, #tpu.memory_space<vmem>>, vector<8x32xf32>
    %cst_19 = arith.constant dense<0.000000e+00> : vector<8x32xf32>
    %34 = tpu.matmul %31, %33, %cst_19 {dimension_numbers = #tpu.dot_dimension_numbers<[1], [0], [0], [1], [0, 0, 1, 1], [], []>} : vector<8x8xf32>, vector<8x32xf32>, vector<8x32xf32> -> vector<8x32xf32>
    %35 = arith.addf %32, %34 : vector<8x32xf32>
    %c0_20 = arith.constant 0 : index
    %c0_21 = arith.constant 0 : index
    %36 = vector.load %arg6[%c0_20, %c0_21] : memref<8x32xf32, #tpu.memory_space<vmem>>, vector<8x32xf32>
    tpu.vector_store %arg6[%c0_20, %c0_21], %35 {strides = array<i32>} : memref<8x32xf32, #tpu.memory_space<vmem>>, vector<8x32xf32>,
    %37 = vector.extract_strided_slice %12 {offsets = [0, 8], sizes = [8, 8], strides = [1, 1]} : vector<8x96xf32> to vector<8x8xf32>
    %cst_22 = arith.constant 0.176776692 : f32
    %38 = vector.broadcast %cst_22 : f32 to vector<8x8xf32>
    %39 = arith.mulf %37, %38 : vector<8x8xf32>
    %40 = vector.extract_strided_slice %12 {offsets = [0, 40], sizes = [8, 8], strides = [1, 1]} : vector<8x96xf32> to vector<8x8xf32>
    %41 = vector.extract_strided_slice %12 {offsets = [0, 72], sizes = [8, 8], strides = [1, 1]} : vector<8x96xf32> to vector<8x8xf32>
    %cst_23 = arith.constant dense<0.000000e+00> : vector<8x8xf32>
    %42 = tpu.matmul %39, %40, %cst_23 {dimension_numbers = #tpu.dot_dimension_numbers<[1], [1], [0], [0], [0, 0, 1, 0], [], []>} : vector<8x8xf32>, vector<8x8xf32>, vector<8x8xf32> -> vector<8x8xf32>
    %43 = arith.addf %42, %5 : vector<8x8xf32>
    %cst_24 = arith.constant dense<0xFF800000> : vector<8xf32>
    %44 = vector.multi_reduction <maximumf>, %43, %cst_24 [1] : vector<8x8xf32> to vector<8xf32>
    %45 = vector.shape_cast %44 : vector<8xf32> to vector<8x1xf32>
    %46 = vector.broadcast %45 : vector<8x1xf32> to vector<8x8xf32>
    %47 = arith.subf %43, %46 : vector<8x8xf32>
    %48 = math.exp %47 : vector<8x8xf32>
    %cst_25 = arith.constant dense<0.000000e+00> : vector<8xf32>
    %49 = vector.multi_reduction <add>, %48, %cst_25 [1] : vector<8x8xf32> to vector<8xf32>
    %50 = vector.shape_cast %49 : vector<8xf32> to vector<8x1xf32>
    %51 = tpu.reciprocal %50 {approx = true} : vector<8x1xf32> -> vector<8x1xf32>
    %52 = vector.broadcast %51 : vector<8x1xf32> to vector<8x8xf32>
    %53 = arith.mulf %48, %52 : vector<8x8xf32>
    %cst_26 = arith.constant dense<0.000000e+00> : vector<8x8xf32>
    %54 = tpu.matmul %53, %41, %cst_26 {dimension_numbers = #tpu.dot_dimension_numbers<[1], [0], [0], [1], [0, 0, 1, 1], [], []>} : vector<8x8xf32>, vector<8x8xf32>, vector<8x8xf32> -> vector<8x8xf32>
    %c0_27 = arith.constant 0 : index
    %c0_28 = arith.constant 0 : index
    %55 = vector.load %arg6[%c0_27, %c0_28] : memref<8x32xf32, #tpu.memory_space<vmem>>, vector<8x32xf32>
    %c8 = arith.constant 8 : index
    %c0_29 = arith.constant 0 : index
    %56 = vector.load %arg3[%c8, %c0_29] : memref<32x32xf32, #tpu.memory_space<vmem>>, vector<8x32xf32>
    %cst_30 = arith.constant dense<0.000000e+00> : vector<8x32xf32>
    %57 = tpu.matmul %54, %56, %cst_30 {dimension_numbers = #tpu.dot_dimension_numbers<[1], [0], [0], [1], [0, 0, 1, 1], [], []>} : vector<8x8xf32>, vector<8x32xf32>, vector<8x32xf32> -> vector<8x32xf32>
    %58 = arith.addf %55, %57 : vector<8x32xf32>
    %c0_31 = arith.constant 0 : index
    %c0_32 = arith.constant 0 : index
    %59 = vector.load %arg6[%c0_31, %c0_32] : memref<8x32xf32, #tpu.memory_space<vmem>>, vector<8x32xf32>
    tpu.vector_store %arg6[%c0_31, %c0_32], %58 {strides = array<i32>} : memref<8x32xf32, #tpu.memory_space<vmem>>, vector<8x32xf32>,
    %60 = vector.extract_strided_slice %12 {offsets = [0, 16], sizes = [8, 8], strides = [1, 1]} : vector<8x96xf32> to vector<8x8xf32>
    %cst_33 = arith.constant 0.176776692 : f32
    %61 = vector.broadcast %cst_33 : f32 to vector<8x8xf32>
    %62 = arith.mulf %60, %61 : vector<8x8xf32>
    %63 = vector.extract_strided_slice %12 {offsets = [0, 48], sizes = [8, 8], strides = [1, 1]} : vector<8x96xf32> to vector<8x8xf32>
    %64 = vector.extract_strided_slice %12 {offsets = [0, 80], sizes = [8, 8], strides = [1, 1]} : vector<8x96xf32> to vector<8x8xf32>
    %cst_34 = arith.constant dense<0.000000e+00> : vector<8x8xf32>
    %65 = tpu.matmul %62, %63, %cst_34 {dimension_numbers = #tpu.dot_dimension_numbers<[1], [1], [0], [0], [0, 0, 1, 0], [], []>} : vector<8x8xf32>, vector<8x8xf32>, vector<8x8xf32> -> vector<8x8xf32>
    %66 = arith.addf %65, %5 : vector<8x8xf32>
    %cst_35 = arith.constant dense<0xFF800000> : vector<8xf32>
    %67 = vector.multi_reduction <maximumf>, %66, %cst_35 [1] : vector<8x8xf32> to vector<8xf32>
    %68 = vector.shape_cast %67 : vector<8xf32> to vector<8x1xf32>
    %69 = vector.broadcast %68 : vector<8x1xf32> to vector<8x8xf32>
    %70 = arith.subf %66, %69 : vector<8x8xf32>
    %71 = math.exp %70 : vector<8x8xf32>
    %cst_36 = arith.constant dense<0.000000e+00> : vector<8xf32>
    %72 = vector.multi_reduction <add>, %71, %cst_36 [1] : vector<8x8xf32> to vector<8xf32>
    %73 = vector.shape_cast %72 : vector<8xf32> to vector<8x1xf32>
    %74 = tpu.reciprocal %73 {approx = true} : vector<8x1xf32> -> vector<8x1xf32>
    %75 = vector.broadcast %74 : vector<8x1xf32> to vector<8x8xf32>
    %76 = arith.mulf %71, %75 : vector<8x8xf32>
    %cst_37 = arith.constant dense<0.000000e+00> : vector<8x8xf32>
    %77 = tpu.matmul %76, %64, %cst_37 {dimension_numbers = #tpu.dot_dimension_numbers<[1], [0], [0], [1], [0, 0, 1, 1], [], []>} : vector<8x8xf32>, vector<8x8xf32>, vector<8x8xf32> -> vector<8x8xf32>
    %c0_38 = arith.constant 0 : index
    %c0_39 = arith.constant 0 : index
    %78 = vector.load %arg6[%c0_38, %c0_39] : memref<8x32xf32, #tpu.memory_space<vmem>>, vector<8x32xf32>
    %c16 = arith.constant 16 : index
    %c0_40 = arith.constant 0 : index
    %79 = vector.load %arg3[%c16, %c0_40] : memref<32x32xf32, #tpu.memory_space<vmem>>, vector<8x32xf32>
    %cst_41 = arith.constant dense<0.000000e+00> : vector<8x32xf32>
    %80 = tpu.matmul %77, %79, %cst_41 {dimension_numbers = #tpu.dot_dimension_numbers<[1], [0], [0], [1], [0, 0, 1, 1], [], []>} : vector<8x8xf32>, vector<8x32xf32>, vector<8x32xf32> -> vector<8x32xf32>
    %81 = arith.addf %78, %80 : vector<8x32xf32>
    %c0_42 = arith.constant 0 : index
    %c0_43 = arith.constant 0 : index
    %82 = vector.load %arg6[%c0_42, %c0_43] : memref<8x32xf32, #tpu.memory_space<vmem>>, vector<8x32xf32>
    tpu.vector_store %arg6[%c0_42, %c0_43], %81 {strides = array<i32>} : memref<8x32xf32, #tpu.memory_space<vmem>>, vector<8x32xf32>,
    %83 = vector.extract_strided_slice %12 {offsets = [0, 24], sizes = [8, 8], strides = [1, 1]} : vector<8x96xf32> to vector<8x8xf32>
    %cst_44 = arith.constant 0.176776692 : f32
    %84 = vector.broadcast %cst_44 : f32 to vector<8x8xf32>
    %85 = arith.mulf %83, %84 : vector<8x8xf32>
    %86 = vector.extract_strided_slice %12 {offsets = [0, 56], sizes = [8, 8], strides = [1, 1]} : vector<8x96xf32> to vector<8x8xf32>
    %87 = vector.extract_strided_slice %12 {offsets = [0, 88], sizes = [8, 8], strides = [1, 1]} : vector<8x96xf32> to vector<8x8xf32>
    %cst_45 = arith.constant dense<0.000000e+00> : vector<8x8xf32>
    %88 = tpu.matmul %85, %86, %cst_45 {dimension_numbers = #tpu.dot_dimension_numbers<[1], [1], [0], [0], [0, 0, 1, 0], [], []>} : vector<8x8xf32>, vector<8x8xf32>, vector<8x8xf32> -> vector<8x8xf32>
    %89 = arith.addf %88, %5 : vector<8x8xf32>
    %cst_46 = arith.constant dense<0xFF800000> : vector<8xf32>
    %90 = vector.multi_reduction <maximumf>, %89, %cst_46 [1] : vector<8x8xf32> to vector<8xf32>
    %91 = vector.shape_cast %90 : vector<8xf32> to vector<8x1xf32>
    %92 = vector.broadcast %91 : vector<8x1xf32> to vector<8x8xf32>
    %93 = arith.subf %89, %92 : vector<8x8xf32>
    %94 = math.exp %93 : vector<8x8xf32>
    %cst_47 = arith.constant dense<0.000000e+00> : vector<8xf32>
    %95 = vector.multi_reduction <add>, %94, %cst_47 [1] : vector<8x8xf32> to vector<8xf32>
    %96 = vector.shape_cast %95 : vector<8xf32> to vector<8x1xf32>
    %97 = tpu.reciprocal %96 {approx = true} : vector<8x1xf32> -> vector<8x1xf32>
    %98 = vector.broadcast %97 : vector<8x1xf32> to vector<8x8xf32>
    %99 = arith.mulf %94, %98 : vector<8x8xf32>
    %cst_48 = arith.constant dense<0.000000e+00> : vector<8x8xf32>
    %100 = tpu.matmul %99, %87, %cst_48 {dimension_numbers = #tpu.dot_dimension_numbers<[1], [0], [0], [1], [0, 0, 1, 1], [], []>} : vector<8x8xf32>, vector<8x8xf32>, vector<8x8xf32> -> vector<8x8xf32>
    %c0_49 = arith.constant 0 : index
    %c0_50 = arith.constant 0 : index
    %101 = vector.load %arg6[%c0_49, %c0_50] : memref<8x32xf32, #tpu.memory_space<vmem>>, vector<8x32xf32>
    %c24 = arith.constant 24 : index
    %c0_51 = arith.constant 0 : index
    %102 = vector.load %arg3[%c24, %c0_51] : memref<32x32xf32, #tpu.memory_space<vmem>>, vector<8x32xf32>
    %cst_52 = arith.constant dense<0.000000e+00> : vector<8x32xf32>
    %103 = tpu.matmul %100, %102, %cst_52 {dimension_numbers = #tpu.dot_dimension_numbers<[1], [0], [0], [1], [0, 0, 1, 1], [], []>} : vector<8x8xf32>, vector<8x32xf32>, vector<8x32xf32> -> vector<8x32xf32>
    %104 = arith.addf %101, %103 : vector<8x32xf32>
    %c0_53 = arith.constant 0 : index
    %c0_54 = arith.constant 0 : index
    %105 = vector.load %arg6[%c0_53, %c0_54] : memref<8x32xf32, #tpu.memory_space<vmem>>, vector<8x32xf32>
    tpu.vector_store %arg6[%c0_53, %c0_54], %104 {strides = array<i32>} : memref<8x32xf32, #tpu.memory_space<vmem>>, vector<8x32xf32>,
    %c0_55 = arith.constant 0 : index
    %c0_56 = arith.constant 0 : index
    %106 = vector.load %arg6[%c0_55, %c0_56] : memref<8x32xf32, #tpu.memory_space<vmem>>, vector<8x32xf32>
    %c0_57 = arith.constant 0 : index
    %c0_58 = arith.constant 0 : index
    %c0_59 = arith.constant 0 : index
    %107 = vector.load %arg5[%c0_57, %c0_58, %c0_59] : memref<2x8x32xf32, #tpu.memory_space<vmem>>, vector<1x8x32xf32>
    %108 = vector.shape_cast %107 : vector<1x8x32xf32> to vector<8x32xf32>
    %109 = vector.shape_cast %106 : vector<8x32xf32> to vector<1x8x32xf32>
    tpu.vector_store %arg5[%c0_57, %c0_58, %c0_59], %109 {strides = array<i32>} : memref<2x8x32xf32, #tpu.memory_space<vmem>>, vector<1x8x32xf32>,
    %c1 = arith.constant 1 : index
    %c0_60 = arith.constant 0 : index
    %c0_61 = arith.constant 0 : index
    %110 = vector.load %arg1[%c1, %c0_60, %c0_61] : memref<2x8x32xf32, #tpu.memory_space<vmem>>, vector<1x8x32xf32>
    %111 = vector.shape_cast %110 : vector<1x8x32xf32> to vector<8x32xf32>
    %c0_62 = arith.constant 0 : index
    %c0_63 = arith.constant 0 : index
    %112 = vector.load %arg2[%c0_62, %c0_63] : memref<32x96xf32, #tpu.memory_space<vmem>>, vector<32x96xf32>
    %cst_64 = arith.constant dense<0.000000e+00> : vector<8x96xf32>
    %113 = tpu.matmul %111, %112, %cst_64 {dimension_numbers = #tpu.dot_dimension_numbers<[1], [0], [0], [1], [0, 0, 1, 1], [], []>} : vector<8x32xf32>, vector<32x96xf32>, vector<8x96xf32> -> vector<8x96xf32>
    %c0_65 = arith.constant 0 : index
    %c0_66 = arith.constant 0 : index
    %114 = vector.load %arg6[%c0_65, %c0_66] : memref<8x32xf32, #tpu.memory_space<vmem>>, vector<8x32xf32>
    tpu.vector_store %arg6[%c0_65, %c0_66], %8 {strides = array<i32>} : memref<8x32xf32, #tpu.memory_space<vmem>>, vector<8x32xf32>,
    %115 = vector.extract_strided_slice %113 {offsets = [0, 0], sizes = [8, 8], strides = [1, 1]} : vector<8x96xf32> to vector<8x8xf32>
    %cst_67 = arith.constant 0.176776692 : f32
    %116 = vector.broadcast %cst_67 : f32 to vector<8x8xf32>
    %117 = arith.mulf %115, %116 : vector<8x8xf32>
    %118 = vector.extract_strided_slice %113 {offsets = [0, 32], sizes = [8, 8], strides = [1, 1]} : vector<8x96xf32> to vector<8x8xf32>
    %119 = vector.extract_strided_slice %113 {offsets = [0, 64], sizes = [8, 8], strides = [1, 1]} : vector<8x96xf32> to vector<8x8xf32>
    %cst_68 = arith.constant dense<0.000000e+00> : vector<8x8xf32>
    %120 = tpu.matmul %117, %118, %cst_68 {dimension_numbers = #tpu.dot_dimension_numbers<[1], [1], [0], [0], [0, 0, 1, 0], [], []>} : vector<8x8xf32>, vector<8x8xf32>, vector<8x8xf32> -> vector<8x8xf32>
    %121 = arith.addf %120, %5 : vector<8x8xf32>
    %cst_69 = arith.constant dense<0xFF800000> : vector<8xf32>
    %122 = vector.multi_reduction <maximumf>, %121, %cst_69 [1] : vector<8x8xf32> to vector<8xf32>
    %123 = vector.shape_cast %122 : vector<8xf32> to vector<8x1xf32>
    %124 = vector.broadcast %123 : vector<8x1xf32> to vector<8x8xf32>
    %125 = arith.subf %121, %124 : vector<8x8xf32>
    %126 = math.exp %125 : vector<8x8xf32>
    %cst_70 = arith.constant dense<0.000000e+00> : vector<8xf32>
    %127 = vector.multi_reduction <add>, %126, %cst_70 [1] : vector<8x8xf32> to vector<8xf32>
    %128 = vector.shape_cast %127 : vector<8xf32> to vector<8x1xf32>
    %129 = tpu.reciprocal %128 {approx = true} : vector<8x1xf32> -> vector<8x1xf32>
    %130 = vector.broadcast %129 : vector<8x1xf32> to vector<8x8xf32>
    %131 = arith.mulf %126, %130 : vector<8x8xf32>
    %cst_71 = arith.constant dense<0.000000e+00> : vector<8x8xf32>
    %132 = tpu.matmul %131, %119, %cst_71 {dimension_numbers = #tpu.dot_dimension_numbers<[1], [0], [0], [1], [0, 0, 1, 1], [], []>} : vector<8x8xf32>, vector<8x8xf32>, vector<8x8xf32> -> vector<8x8xf32>
    %c0_72 = arith.constant 0 : index
    %c0_73 = arith.constant 0 : index
    %133 = vector.load %arg6[%c0_72, %c0_73] : memref<8x32xf32, #tpu.memory_space<vmem>>, vector<8x32xf32>
    %c0_74 = arith.constant 0 : index
    %c0_75 = arith.constant 0 : index
    %134 = vector.load %arg3[%c0_74, %c0_75] : memref<32x32xf32, #tpu.memory_space<vmem>>, vector<8x32xf32>
    %cst_76 = arith.constant dense<0.000000e+00> : vector<8x32xf32>
    %135 = tpu.matmul %132, %134, %cst_76 {dimension_numbers = #tpu.dot_dimension_numbers<[1], [0], [0], [1], [0, 0, 1, 1], [], []>} : vector<8x8xf32>, vector<8x32xf32>, vector<8x32xf32> -> vector<8x32xf32>
    %136 = arith.addf %133, %135 : vector<8x32xf32>
    %c0_77 = arith.constant 0 : index
    %c0_78 = arith.constant 0 : index
    %137 = vector.load %arg6[%c0_77, %c0_78] : memref<8x32xf32, #tpu.memory_space<vmem>>, vector<8x32xf32>
    tpu.vector_store %arg6[%c0_77, %c0_78], %136 {strides = array<i32>} : memref<8x32xf32, #tpu.memory_space<vmem>>, vector<8x32xf32>,
    %138 = vector.extract_strided_slice %113 {offsets = [0, 8], sizes = [8, 8], strides = [1, 1]} : vector<8x96xf32> to vector<8x8xf32>
    %cst_79 = arith.constant 0.176776692 : f32
    %139 = vector.broadcast %cst_79 : f32 to vector<8x8xf32>
    %140 = arith.mulf %138, %139 : vector<8x8xf32>
    %141 = vector.extract_strided_slice %113 {offsets = [0, 40], sizes = [8, 8], strides = [1, 1]} : vector<8x96xf32> to vector<8x8xf32>
    %142 = vector.extract_strided_slice %113 {offsets = [0, 72], sizes = [8, 8], strides = [1, 1]} : vector<8x96xf32> to vector<8x8xf32>
    %cst_80 = arith.constant dense<0.000000e+00> : vector<8x8xf32>
    %143 = tpu.matmul %140, %141, %cst_80 {dimension_numbers = #tpu.dot_dimension_numbers<[1], [1], [0], [0], [0, 0, 1, 0], [], []>} : vector<8x8xf32>, vector<8x8xf32>, vector<8x8xf32> -> vector<8x8xf32>
    %144 = arith.addf %143, %5 : vector<8x8xf32>
    %cst_81 = arith.constant dense<0xFF800000> : vector<8xf32>
    %145 = vector.multi_reduction <maximumf>, %144, %cst_81 [1] : vector<8x8xf32> to vector<8xf32>
    %146 = vector.shape_cast %145 : vector<8xf32> to vector<8x1xf32>
    %147 = vector.broadcast %146 : vector<8x1xf32> to vector<8x8xf32>
    %148 = arith.subf %144, %147 : vector<8x8xf32>
    %149 = math.exp %148 : vector<8x8xf32>
    %cst_82 = arith.constant dense<0.000000e+00> : vector<8xf32>
    %150 = vector.multi_reduction <add>, %149, %cst_82 [1] : vector<8x8xf32> to vector<8xf32>
    %151 = vector.shape_cast %150 : vector<8xf32> to vector<8x1xf32>
    %152 = tpu.reciprocal %151 {approx = true} : vector<8x1xf32> -> vector<8x1xf32>
    %153 = vector.broadcast %152 : vector<8x1xf32> to vector<8x8xf32>
    %154 = arith.mulf %149, %153 : vector<8x8xf32>
    %cst_83 = arith.constant dense<0.000000e+00> : vector<8x8xf32>
    %155 = tpu.matmul %154, %142, %cst_83 {dimension_numbers = #tpu.dot_dimension_numbers<[1], [0], [0], [1], [0, 0, 1, 1], [], []>} : vector<8x8xf32>, vector<8x8xf32>, vector<8x8xf32> -> vector<8x8xf32>
    %c0_84 = arith.constant 0 : index
    %c0_85 = arith.constant 0 : index
    %156 = vector.load %arg6[%c0_84, %c0_85] : memref<8x32xf32, #tpu.memory_space<vmem>>, vector<8x32xf32>
    %c8_86 = arith.constant 8 : index
    %c0_87 = arith.constant 0 : index
    %157 = vector.load %arg3[%c8_86, %c0_87] : memref<32x32xf32, #tpu.memory_space<vmem>>, vector<8x32xf32>
    %cst_88 = arith.constant dense<0.000000e+00> : vector<8x32xf32>
    %158 = tpu.matmul %155, %157, %cst_88 {dimension_numbers = #tpu.dot_dimension_numbers<[1], [0], [0], [1], [0, 0, 1, 1], [], []>} : vector<8x8xf32>, vector<8x32xf32>, vector<8x32xf32> -> vector<8x32xf32>
    %159 = arith.addf %156, %158 : vector<8x32xf32>
    %c0_89 = arith.constant 0 : index
    %c0_90 = arith.constant 0 : index
    %160 = vector.load %arg6[%c0_89, %c0_90] : memref<8x32xf32, #tpu.memory_space<vmem>>, vector<8x32xf32>
    tpu.vector_store %arg6[%c0_89, %c0_90], %159 {strides = array<i32>} : memref<8x32xf32, #tpu.memory_space<vmem>>, vector<8x32xf32>,
    %161 = vector.extract_strided_slice %113 {offsets = [0, 16], sizes = [8, 8], strides = [1, 1]} : vector<8x96xf32> to vector<8x8xf32>
    %cst_91 = arith.constant 0.176776692 : f32
    %162 = vector.broadcast %cst_91 : f32 to vector<8x8xf32>
    %163 = arith.mulf %161, %162 : vector<8x8xf32>
    %164 = vector.extract_strided_slice %113 {offsets = [0, 48], sizes = [8, 8], strides = [1, 1]} : vector<8x96xf32> to vector<8x8xf32>
    %165 = vector.extract_strided_slice %113 {offsets = [0, 80], sizes = [8, 8], strides = [1, 1]} : vector<8x96xf32> to vector<8x8xf32>
    %cst_92 = arith.constant dense<0.000000e+00> : vector<8x8xf32>
    %166 = tpu.matmul %163, %164, %cst_92 {dimension_numbers = #tpu.dot_dimension_numbers<[1], [1], [0], [0], [0, 0, 1, 0], [], []>} : vector<8x8xf32>, vector<8x8xf32>, vector<8x8xf32> -> vector<8x8xf32>
    %167 = arith.addf %166, %5 : vector<8x8xf32>
    %cst_93 = arith.constant dense<0xFF800000> : vector<8xf32>
    %168 = vector.multi_reduction <maximumf>, %167, %cst_93 [1] : vector<8x8xf32> to vector<8xf32>
    %169 = vector.shape_cast %168 : vector<8xf32> to vector<8x1xf32>
    %170 = vector.broadcast %169 : vector<8x1xf32> to vector<8x8xf32>
    %171 = arith.subf %167, %170 : vector<8x8xf32>
    %172 = math.exp %171 : vector<8x8xf32>
    %cst_94 = arith.constant dense<0.000000e+00> : vector<8xf32>
    %173 = vector.multi_reduction <add>, %172, %cst_94 [1] : vector<8x8xf32> to vector<8xf32>
    %174 = vector.shape_cast %173 : vector<8xf32> to vector<8x1xf32>
    %175 = tpu.reciprocal %174 {approx = true} : vector<8x1xf32> -> vector<8x1xf32>
    %176 = vector.broadcast %175 : vector<8x1xf32> to vector<8x8xf32>
    %177 = arith.mulf %172, %176 : vector<8x8xf32>
    %cst_95 = arith.constant dense<0.000000e+00> : vector<8x8xf32>
    %178 = tpu.matmul %177, %165, %cst_95 {dimension_numbers = #tpu.dot_dimension_numbers<[1], [0], [0], [1], [0, 0, 1, 1], [], []>} : vector<8x8xf32>, vector<8x8xf32>, vector<8x8xf32> -> vector<8x8xf32>
    %c0_96 = arith.constant 0 : index
    %c0_97 = arith.constant 0 : index
    %179 = vector.load %arg6[%c0_96, %c0_97] : memref<8x32xf32, #tpu.memory_space<vmem>>, vector<8x32xf32>
    %c16_98 = arith.constant 16 : index
    %c0_99 = arith.constant 0 : index
    %180 = vector.load %arg3[%c16_98, %c0_99] : memref<32x32xf32, #tpu.memory_space<vmem>>, vector<8x32xf32>
    %cst_100 = arith.constant dense<0.000000e+00> : vector<8x32xf32>
    %181 = tpu.matmul %178, %180, %cst_100 {dimension_numbers = #tpu.dot_dimension_numbers<[1], [0], [0], [1], [0, 0, 1, 1], [], []>} : vector<8x8xf32>, vector<8x32xf32>, vector<8x32xf32> -> vector<8x32xf32>
    %182 = arith.addf %179, %181 : vector<8x32xf32>
    %c0_101 = arith.constant 0 : index
    %c0_102 = arith.constant 0 : index
    %183 = vector.load %arg6[%c0_101, %c0_102] : memref<8x32xf32, #tpu.memory_space<vmem>>, vector<8x32xf32>
    tpu.vector_store %arg6[%c0_101, %c0_102], %182 {strides = array<i32>} : memref<8x32xf32, #tpu.memory_space<vmem>>, vector<8x32xf32>,
    %184 = vector.extract_strided_slice %113 {offsets = [0, 24], sizes = [8, 8], strides = [1, 1]} : vector<8x96xf32> to vector<8x8xf32>
    %cst_103 = arith.constant 0.176776692 : f32
    %185 = vector.broadcast %cst_103 : f32 to vector<8x8xf32>
    %186 = arith.mulf %184, %185 : vector<8x8xf32>
    %187 = vector.extract_strided_slice %113 {offsets = [0, 56], sizes = [8, 8], strides = [1, 1]} : vector<8x96xf32> to vector<8x8xf32>
    %188 = vector.extract_strided_slice %113 {offsets = [0, 88], sizes = [8, 8], strides = [1, 1]} : vector<8x96xf32> to vector<8x8xf32>
    %cst_104 = arith.constant dense<0.000000e+00> : vector<8x8xf32>
    %189 = tpu.matmul %186, %187, %cst_104 {dimension_numbers = #tpu.dot_dimension_numbers<[1], [1], [0], [0], [0, 0, 1, 0], [], []>} : vector<8x8xf32>, vector<8x8xf32>, vector<8x8xf32> -> vector<8x8xf32>
    %190 = arith.addf %189, %5 : vector<8x8xf32>
    %cst_105 = arith.constant dense<0xFF800000> : vector<8xf32>
    %191 = vector.multi_reduction <maximumf>, %190, %cst_105 [1] : vector<8x8xf32> to vector<8xf32>
    %192 = vector.shape_cast %191 : vector<8xf32> to vector<8x1xf32>
    %193 = vector.broadcast %192 : vector<8x1xf32> to vector<8x8xf32>
    %194 = arith.subf %190, %193 : vector<8x8xf32>
    %195 = math.exp %194 : vector<8x8xf32>
    %cst_106 = arith.constant dense<0.000000e+00> : vector<8xf32>
    %196 = vector.multi_reduction <add>, %195, %cst_106 [1] : vector<8x8xf32> to vector<8xf32>
    %197 = vector.shape_cast %196 : vector<8xf32> to vector<8x1xf32>
    %198 = tpu.reciprocal %197 {approx = true} : vector<8x1xf32> -> vector<8x1xf32>
    %199 = vector.broadcast %198 : vector<8x1xf32> to vector<8x8xf32>
    %200 = arith.mulf %195, %199 : vector<8x8xf32>
    %cst_107 = arith.constant dense<0.000000e+00> : vector<8x8xf32>
    %201 = tpu.matmul %200, %188, %cst_107 {dimension_numbers = #tpu.dot_dimension_numbers<[1], [0], [0], [1], [0, 0, 1, 1], [], []>} : vector<8x8xf32>, vector<8x8xf32>, vector<8x8xf32> -> vector<8x8xf32>
    %c0_108 = arith.constant 0 : index
    %c0_109 = arith.constant 0 : index
    %202 = vector.load %arg6[%c0_108, %c0_109] : memref<8x32xf32, #tpu.memory_space<vmem>>, vector<8x32xf32>
    %c24_110 = arith.constant 24 : index
    %c0_111 = arith.constant 0 : index
    %203 = vector.load %arg3[%c24_110, %c0_111] : memref<32x32xf32, #tpu.memory_space<vmem>>, vector<8x32xf32>
    %cst_112 = arith.constant dense<0.000000e+00> : vector<8x32xf32>
    %204 = tpu.matmul %201, %203, %cst_112 {dimension_numbers = #tpu.dot_dimension_numbers<[1], [0], [0], [1], [0, 0, 1, 1], [], []>} : vector<8x8xf32>, vector<8x32xf32>, vector<8x32xf32> -> vector<8x32xf32>
    %205 = arith.addf %202, %204 : vector<8x32xf32>
    %c0_113 = arith.constant 0 : index
    %c0_114 = arith.constant 0 : index
    %206 = vector.load %arg6[%c0_113, %c0_114] : memref<8x32xf32, #tpu.memory_space<vmem>>, vector<8x32xf32>
    tpu.vector_store %arg6[%c0_113, %c0_114], %205 {strides = array<i32>} : memref<8x32xf32, #tpu.memory_space<vmem>>, vector<8x32xf32>,
    %c0_115 = arith.constant 0 : index
    %c0_116 = arith.constant 0 : index
    %207 = vector.load %arg6[%c0_115, %c0_116] : memref<8x32xf32, #tpu.memory_space<vmem>>, vector<8x32xf32>
    %c1_117 = arith.constant 1 : index
    %c0_118 = arith.constant 0 : index
    %c0_119 = arith.constant 0 : index
    %208 = vector.load %arg5[%c1_117, %c0_118, %c0_119] : memref<2x8x32xf32, #tpu.memory_space<vmem>>, vector<1x8x32xf32>
    %209 = vector.shape_cast %208 : vector<1x8x32xf32> to vector<8x32xf32>
    %210 = vector.shape_cast %207 : vector<8x32xf32> to vector<1x8x32xf32>
    tpu.vector_store %arg5[%c1_117, %c0_118, %c0_119], %210 {strides = array<i32>} : memref<2x8x32xf32, #tpu.memory_space<vmem>>, vector<1x8x32xf32>,
    return
  }
  func.func @transform_0(%arg0: i32) -> (i32, i32, i32) {
    %c0_i32 = arith.constant 0 : i32
    %c0_i32_0 = arith.constant 0 : i32
    %c0_i32_1 = arith.constant 0 : i32
    return %arg0, %c0_i32, %c0_i32_0 : i32, i32, i32
  }
  func.func @transform_1(%arg0: i32) -> (i32, i32) {
    %c0_i32 = arith.constant 0 : i32
    %c0_i32_0 = arith.constant 0 : i32
    %c0_i32_1 = arith.constant 0 : i32
    return %c0_i32, %c0_i32_0 : i32, i32
  }
  func.func @transform_2(%arg0: i32) -> (i32, i32) {
    %c0_i32 = arith.constant 0 : i32
    %c0_i32_0 = arith.constant 0 : i32
    %c0_i32_1 = arith.constant 0 : i32
    return %c0_i32, %c0_i32_0 : i32, i32
  }
  func.func @transform_3(%arg0: i32) -> (i32, i32) {
    %c0_i32 = arith.constant 0 : i32
    %c0_i32_0 = arith.constant 0 : i32
    %c0_i32_1 = arith.constant 0 : i32
    return %c0_i32, %c0_i32_0 : i32, i32
  }
  func.func @transform_4(%arg0: i32) -> (i32, i32, i32) {
    %c0_i32 = arith.constant 0 : i32
    %c0_i32_0 = arith.constant 0 : i32
    %c0_i32_1 = arith.constant 0 : i32
    return %arg0, %c0_i32, %c0_i32_0 : i32, i32, i32
  }
}

</mosaic_0001>

<bundles_post_ra>
// kernel: tpu_custom_call.1
= control target key start
LH: loop header
LB: loop body
LE: loop exit
PB: predicated region body
PF: predicated region fallthrough
CT: control target
= control target key end

     0   :  { %9 = vsyncpa [#allocation4], 0  ;;  %s2887_s0 = inlined_call_operand.hbm [shape: f32[2,8,32], index: 0, kind: input, shape index: {}]   ;;  %s2888_s1 = inlined_call_operand.hbm [shape: f32[32,96], index: 1, kind: input, shape index: {}]   ;;  %s2889_s2 = inlined_call_operand.hbm [shape: f32[32,32], index: 2, kind: input, shape index: {}]   ;;  %s2890_s3 = inlined_call_operand.vmem [shape: f32[1,32], index: 3, kind: input, shape index: {}]   ;;  %s2891_s4 = inlined_call_operand.hbm [shape: f32[2,8,32], index: 4, kind: output, shape index: {}]  }
   0x1   :  { %10 = vsyncpa [#allocation7], 0 }
   0x2   :  { %11 = vsyncpa [#allocation5], 0  ;;  %s2567_s15 = smov [#allocation6]   ;;  %s2568_s17 = smov [#allocation3]  }
   0x3   :  { %s29_s16 = sshll.u32 %s2567_s15, 4  ;;  %s17_s18 = sshll.u32 %s2568_s17, 4  ;;  %s30_s16 = int_to_ptr.vmem [resolvable:$true] %s29_s16  ;;  %s18_s18 = int_to_ptr.vmem [resolvable:$true] %s17_s18 }
   0x4   :  { %s2489_s19 = scalar_lea.vmem %s30_s16, 512  ;;  %p2494_p1 = scmp.lt.s32.totalorder %s30_s16, %s30_s16 }
   0x5   :  { %p2490_p0 = scmp.ne.s32.totalorder %s30_s16, %s2489_s19  ;;  %p2495_p2 = scmp.lt.s32.totalorder %s2489_s19, %s2489_s19 }
   0x7   :  { %p2496_p3 = por %p2495_p2, %p2494_p1 }
   0x9   :  { %p2497_p4 = pnand %p2496_p3, %p2490_p0 }
   0xb   :  { %2500 = shalt.err (!%p2497_p4)
}
   0xc   :  { %s2569_s20 = smov 128   ;;  %s2570_s21 = smov 8  }
   0xd   :  { %35 = dma.hbm_to_vmem [thread:$0]  %s2888_s1, 512, %s30_s16, [#allocation7], %s2569_s20, %s2569_s20, %s2570_s21  }
   0xe   :  { %s2509_s24 = scalar_lea.vmem %s18_s18, 256  ;;  %p2514_p6 = scmp.lt.s32.totalorder %s18_s18, %s18_s18 }
   0xf   :  { %p2510_p5 = scmp.ne.s32.totalorder %s18_s18, %s2509_s24  ;;  %p2515_p7 = scmp.lt.s32.totalorder %s2509_s24, %s2509_s24 }
  0x11   :  { %p2516_p8 = por %p2515_p7, %p2514_p6 }
  0x13   :  { %p2517_p9 = pnand %p2516_p8, %p2510_p5 }
  0x15   :  { %2520 = shalt.err (!%p2517_p9)
}
  0x16   :  { %23 = dma.hbm_to_vmem [thread:$0]  %s2887_s0, 256, %s18_s18, [#allocation4], %s2569_s20, %s2569_s20, %s2570_s21  }
  0x17   :  { %s2571_s27 = smov [#allocation8]  }
  0x18   :  { %s41_s28 = sshll.u32 %s2571_s27, 4  ;;  %s42_s28 = int_to_ptr.vmem [resolvable:$true] %s41_s28 }
  0x19   :  { %s2529_s29 = scalar_lea.vmem %s42_s28, 512  ;;  %p2534_p11 = scmp.lt.s32.totalorder %s42_s28, %s42_s28 }
  0x1a   :  { %p2530_p10 = scmp.ne.s32.totalorder %s42_s28, %s2529_s29  ;;  %p2535_p12 = scmp.lt.s32.totalorder %s2529_s29, %s2529_s29 }
  0x1c   :  { %p2536_p13 = por %p2535_p12, %p2534_p11 }
  0x1e   :  { %p2537_p0 = pnand %p2536_p13, %p2530_p10 }
  0x20   :  { %2540 = shalt.err (!%p2537_p0)
}
  0x21   :  { %47 = dma.hbm_to_vmem [thread:$0]  %s2889_s2, 512, %s42_s28, [#allocation7], %s2569_s20, %s2569_s20, %s2570_s21  }
  0x22   :  { %2561 = dma.done.wait [#allocation4], 256  }
  0x23   :  { %2562 = vsyncadd [#allocation4], 4294967040 }
  0x24   :  { %2563 = dma.done.wait [#allocation7], 1024  }
  0x25   :  { %2564 = vsyncadd [#allocation7], 4294966272  ;;  %v2572_v0 = vmov 0.0   ;;  %vm2573_vm0 = vmmov 0   ;;  %v2636_v1 = vld [vmem:[#allocation6 + $0x18] sm:$0xff]  ;;  %v2638_v2 = vld [vmem:[#allocation6 + $0x10] sm:$0xff]  ;;  %v59_v11 = vlaneseq }
  0x26   :  { %2287 = vmatprep.subr.mxu0 %v2572_v0  ;;  %2295 = vmatprep.mubr.msk.f32.mxu0 %vm2573_vm0, %v2572_v0  ;;  %v2642_v3 = vld [vmem:[#allocation6 + $0x8] sm:$0xff]  ;;  %v2646_v4 = vld [vmem:[#allocation6] sm:$0xff]  ;;  %v72_v5 = vld [vmem:[#allocation3] sm:$0xff]  ;;  %vm77_vm1 = vcmask 261120   ;;  %s2574_s0 = smov 64   ;;  %s2575_s2 = smov 96  }
  0x27   :  { %2298 = vmatprep.subr.mxu1 %v2572_v0  ;;  %2300 = vmatprep.mubr.msk.f32.mxu1 %vm2573_vm0, %v2572_v0  ;;  %s2576_s5 = smov 88   ;;  %vm156_vm2 = vcmask 64512   ;;  %v60_v12 = vshrl.u32 %v59_v11, 7  ;;  %v62_v13 = vand.u32 127, %v59_v11  ;;  %v2577_v14 = vmov -1e+30  }
  0x28   :  { %2288 = vmatpush3.msra.mxu0 %v2636_v1  ;;  %s2578_s6 = smov 56   ;;  %s2579_s7 = smov 120   ;;  %v2682_v25 = vld [vmem:[#allocation8] sm:$0xff]  ;;  %v2703_v38 = vld [vmem:[%s2890_s3] ss:$0 sm:$0xff] }
  0x29   :  { %2289 = vmatprep.subr.mxu0 %v2572_v0  ;;  %vm63_vm3 = vcmp.le.s32.totalorder %v62_v13, %v60_v12  ;;  %151 = vst.msk [vmem:[#allocation2] sm:$0xff] %vm77_vm1, %v2703_v38  ;;  %s2580_s10 = smov 80   ;;  %s2581_s11 = smov 112   ;;  %v2721_v53 = vld [vmem:[#allocation8 + $0x8] sm:$0xff] }
  0x2a   :  { %2290 = vmatpush3.msra.mxu0 %v2638_v2  ;;  %v2673_v15 = vsel %vm63_vm3, 0.0, %v2577_v14  ;;  %s2582_s3 = smov 48   ;;  %s2583_s12 = smov 72  }
  0x2b   :  { %2291 = vmatprep.subr.mxu0 %v2572_v0  ;;  %s2584_s13 = smov 104   ;;  %s2585_s14 = smov 40  }
  0x2c   :  { %2292 = vmatpush3.msra.mxu0 %v2642_v3  ;;  %s2586_s15 = smov [#allocation9]  }
  0x2d   :  { %2293 = vmatprep.subr.mxu0 %v2572_v0  ;;  %s2181_s16 = sshll.u32 %s2586_s15, 4  ;;  %s2182_s16 = int_to_ptr.vmem [resolvable:$true] %s2181_s16 }
  0x2e   :  { %2294 = vmatpush3.msra.mxu0 %v2646_v4  ;;  %s2541_s17 = scalar_lea.vmem %s2182_s16, 256  ;;  %p2546_p2 = scmp.lt.s32.totalorder %s2182_s16, %s2182_s16 }
  0x2f   :  { %2296 = vmatmul.mubr.msk.f32.vlgmr.msra.gmra.mxu0 %vm77_vm1, %v72_v5  ;;  %2308 = vmatprep.subr.mxu0 %v2572_v0  ;;  %p2542_p1 = scmp.ne.s32.totalorder %s2182_s16, %s2541_s17  ;;  %p2547_p3 = scmp.lt.s32.totalorder %s2541_s17, %s2541_s17 }
  0x30   :  { %2310 = vmatprep.mubr.msk.f32.mxu0 %vm2573_vm0, %v2572_v0  ;;  %2309 = vmatpush3.msra.mxu0 %v2682_v25  ;;  %v319_v44 = vld [vmem:[#allocation2] sm:$0xff] }
  0x31   :  { %2318 = vmatprep.subr.mxu0 %v2572_v0  ;;  %p2548_p4 = por %p2547_p3, %p2546_p2 }
  0x33   :  { %p2549_p5 = pnand %p2548_p4, %p2542_p1 }
  0xef   :  { %v2655_v6 = vpop.f32.mrf.mxu0 }
  0xf0   :  { %243 = vrot.lane.b32.xlu1 %v2655_v6, %s2574_s0  ;;  %154 = vrot.lane.b32.xlu0 %v2655_v6, %s2575_s2  ;;  %v2665_v9 = vmul.f32 0.17677669, %v2655_v6 }
  0xf1   :  { %v2297_v7 = vpop.f32.mrf.mxu0 }
  0xf4   :  { %398 = vrot.lane.b32.xlu1 %v2655_v6, %s2576_s5 }
 0x162   :  { %v155_v8 = vpop.permute.xlu0 %154  ;;  %v244_v10 = vpop.permute.xlu1 %243 }
 0x163   :  { %2299 = vmatpush3.xpose.msk.msra.mxu1 %vm156_vm2, %v155_v8 }
 0x164   :  { %2303 = vmatprep.subr.mxu1 %v2572_v0 }
 0x166   :  { %2301 = vmatmul.mubr.msk.f32.vlgmr.msra.gmra.mxu1 %vm156_vm2, %v2665_v9  ;;  %v399_v26 = vpop.permute.xlu1 %398 }
 0x167   :  { %2304 = vmatpush3.msra.mxu1 %v244_v10  ;;  %2305 = vmatprep.mubr.msk.f32.mxu1 %vm2573_vm0, %v2572_v0 }
 0x168   :  { %2313 = vmatprep.subr.mxu1 %v2572_v0 }
 0x226   :  { %v228_v16 = vpop.f32.mrf.mxu1 }
 0x227   :  { %v229_v17 = vadd.f32 %v228_v16, %v2673_v15 }
 0x228   :  { %v2302_v18 = vpop.f32.mrf.mxu1 }
 0x229   :  { %v232_v19 = vsel %vm156_vm2, %v229_v17, -inf  ;;  %v2747_v18 = vld [vmem:[#allocation8 + $0x10] sm:$0xff] }
 0x22a   :  { %233 = vmax.xlane.f32.xlu0 %v232_v19 }
 0x240   :  { %485 = vrot.lane.b32.xlu0 %v2655_v6, %s2578_s6 }
 0x2b3   :  { %v234_v20 = vpop.xlane.xlu0 %233 }
 0x2b4   :  { %v235_v21 = vsub.f32 %v229_v17, %v234_v20 }
 0x2b6   :  { %v236_v22 = vmul.f32 1.442695, %v235_v21 }
 0x2b7   :  { %v486_v32 = vpop.permute.xlu0 %485 }
 0x2b8   :  { %2449 = vpow2.f32 %v236_v22 }
 0x2c5   :  { %v2450_v23 = vpop.eup %2449 }
 0x2c6   :  { %v238_v24 = vsel %vm156_vm2, %v2450_v23, 0.0 }
 0x2c7   :  { %239 = vadd.xlane.f32.xlu1 %v238_v24 }
 0x2d8   :  { %396 = vrot.lane.b32.xlu1 %v2665_v9, %s2579_s7 }
 0x350   :  { %v240_v27 = vpop.xlane.xlu1 %239 }
 0x351   :  { %2451 = vrcp.f32 %v240_v27 }
 0x354   :  { %v397_v30 = vpop.permute.xlu1 %396 }
 0x35e   :  { %v2452_v28 = vpop.eup %2451 }
 0x35f   :  { %v242_v29 = vmul.f32 %v2452_v28, %v2450_v23 }
 0x361   :  { %2306 = vmatmul.mubr.msk.f32.vlgmr.msra.gmra.mxu1 %vm156_vm2, %v242_v29 }
 0x362   :  { %2314 = vmatpush3.xpose.msk.msra.mxu1 %vm156_vm2, %v399_v26  ;;  %2315 = vmatprep.mubr.msk.f32.mxu1 %vm2573_vm0, %v2572_v0 }
 0x363   :  { %2323 = vmatprep.subr.mxu1 %v2572_v0 }
 0x365   :  { %2316 = vmatmul.mubr.msk.f32.vlgmr.msra.gmra.mxu1 %vm156_vm2, %v397_v30 }
 0x366   :  { %2325 = vmatprep.mubr.msk.f32.mxu1 %vm2573_vm0, %v2572_v0  ;;  %2324 = vmatpush3.msra.mxu1 %v2721_v53 }
 0x367   :  { %2333 = vmatprep.subr.mxu1 %v2572_v0 }
 0x421   :  { %v315_v31 = vpop.f32.mrf.mxu1 }
 0x422   :  { %2311 = vmatmul.mubr.msk.f32.vlgmr.msra.gmra.mxu0 %vm156_vm2, %v315_v31 }
 0x423   :  { %2319 = vmatpush3.msra.mxu0 %v486_v32  ;;  %v2307_v33 = vpop.f32.mrf.mxu1  ;;  %2320 = vmatprep.mubr.msk.f32.mxu0 %vm2573_vm0, %v2572_v0 }
 0x424   :  { %2328 = vmatprep.subr.mxu0 %v2572_v0 }
 0x425   :  { %v470_v34 = vpop.f32.mrf.mxu1 }
 0x426   :  { %v471_v35 = vadd.f32 %v470_v34, %v2673_v15 }
 0x427   :  { %v2317_v36 = vpop.f32.mrf.mxu1 }
 0x428   :  { %v474_v37 = vsel %vm156_vm2, %v471_v35, -inf }
 0x429   :  { %475 = vmax.xlane.f32.xlu1 %v474_v37 }
 0x4b2   :  { %v476_v39 = vpop.xlane.xlu1 %475 }
 0x4b3   :  { %v477_v40 = vsub.f32 %v471_v35, %v476_v39 }
 0x4b5   :  { %v478_v41 = vmul.f32 1.442695, %v477_v40 }
 0x4b7   :  { %2453 = vpow2.f32 %v478_v41 }
 0x4c4   :  { %v2454_v42 = vpop.eup %2453 }
 0x4c5   :  { %v480_v43 = vsel %vm156_vm2, %v2454_v42, 0.0 }
 0x4c6   :  { %481 = vadd.xlane.f32.xlu0 %v480_v43 }
 0x4dc   :  { %640 = vrot.lane.b32.xlu0 %v2655_v6, %s2580_s10 }
 0x4e0   :  { %638 = vrot.lane.b32.xlu0 %v2665_v9, %s2581_s11 }
 0x4e2   :  { %v390_v45 = vpop.f32.mrf.mxu0 }
 0x4e3   :  { %v394_v46 = vadd.f32 %v390_v45, %v319_v44 }
 0x4e4   :  { %v2312_v47 = vpop.f32.mrf.mxu0 }
 0x4e5   :  { %395 = vst.msk [vmem:[#allocation2] sm:$0xff] %vm77_vm1, %v394_v46 }
 0x4ec   :  { %v561_v8 = vld [vmem:[#allocation2] sm:$0xff] }
 0x54f   :  { %v482_v48 = vpop.xlane.xlu0 %481 }
 0x550   :  { %2455 = vrcp.f32 %v482_v48 }
 0x553   :  { %v641_v50 = vpop.permute.xlu0 %640 }
 0x557   :  { %v639_v52 = vpop.permute.xlu0 %638 }
 0x55d   :  { %v2456_v49 = vpop.eup %2455 }
 0x55e   :  { %v484_v51 = vmul.f32 %v2456_v49, %v2454_v42 }
 0x560   :  { %2321 = vmatmul.mubr.msk.f32.vlgmr.msra.gmra.mxu0 %vm156_vm2, %v484_v51 }
 0x561   :  { %2329 = vmatpush3.xpose.msk.msra.mxu0 %vm156_vm2, %v641_v50  ;;  %2330 = vmatprep.mubr.msk.f32.mxu0 %vm2573_vm0, %v2572_v0 }
 0x562   :  { %2338 = vmatprep.subr.mxu0 %v2572_v0 }
 0x564   :  { %2331 = vmatmul.mubr.msk.f32.vlgmr.msra.gmra.mxu0 %vm156_vm2, %v639_v52 }
 0x565   :  { %2340 = vmatprep.mubr.msk.f32.mxu0 %vm2573_vm0, %v2572_v0  ;;  %2339 = vmatpush3.msra.mxu0 %v2747_v18 }
 0x566   :  { %2348 = vmatprep.subr.mxu0 %v2572_v0 }
 0x620   :  { %v557_v54 = vpop.f32.mrf.mxu0 }
 0x621   :  { %2326 = vmatmul.mubr.msk.f32.vlgmr.msra.gmra.mxu1 %vm156_vm2, %v557_v54 }
 0x622   :  { %v2322_v55 = vpop.f32.mrf.mxu0  ;;  %2335 = vmatprep.mubr.msk.f32.mxu1 %vm2573_vm0, %v2572_v0 }
 0x624   :  { %v712_v56 = vpop.f32.mrf.mxu0 }
 0x625   :  { %v713_v57 = vadd.f32 %v712_v56, %v2673_v15 }
 0x626   :  { %v2332_v58 = vpop.f32.mrf.mxu0 }
 0x627   :  { %v716_v59 = vsel %vm156_vm2, %v713_v57, -inf }
 0x628   :  { %717 = vmax.xlane.f32.xlu1 %v716_v59 }
 0x639   :  { %727 = vrot.lane.b32.xlu1 %v2655_v6, %s2582_s3 }
 0x63d   :  { %882 = vrot.lane.b32.xlu1 %v2655_v6, %s2583_s12 }
 0x641   :  { %880 = vrot.lane.b32.xlu1 %v2665_v9, %s2584_s13 }
 0x6b1   :  { %v718_v60 = vpop.xlane.xlu1 %717 }
 0x6b2   :  { %v719_v61 = vsub.f32 %v713_v57, %v718_v60 }
 0x6b4   :  { %v720_v62 = vmul.f32 1.442695, %v719_v61 }
 0x6b5   :  { %v728_v63 = vpop.permute.xlu1 %727 }
 0x6b6   :  { %2457 = vpow2.f32 %v720_v62  ;;  %2334 = vmatpush3.msra.mxu1 %v728_v63 }
 0x6b7   :  { %2343 = vmatprep.subr.mxu1 %v2572_v0 }
 0x6b9   :  { %v883_v14 = vpop.permute.xlu1 %882 }
 0x6bd   :  { %v881_v17 = vpop.permute.xlu1 %880 }
 0x6c3   :  { %v2458_v5 = vpop.eup %2457 }
 0x6c4   :  { %v722_v7 = vsel %vm156_vm2, %v2458_v5, 0.0 }
 0x6c5   :  { %723 = vadd.xlane.f32.xlu0 %v722_v7 }
 0x6e1   :  { %v632_v10 = vpop.f32.mrf.mxu1 }
 0x6e2   :  { %v636_v11 = vadd.f32 %v632_v10, %v561_v8 }
 0x6e3   :  { %v2327_v12 = vpop.f32.mrf.mxu1 }
 0x6e4   :  { %637 = vst.msk [vmem:[#allocation2] sm:$0xff] %vm77_vm1, %v636_v11 }
 0x6eb   :  { %v803_v31 = vld [vmem:[#allocation2] sm:$0xff] }
 0x74e   :  { %v724_v13 = vpop.xlane.xlu0 %723 }
 0x74f   :  { %2459 = vrcp.f32 %v724_v13 }
 0x75c   :  { %v2460_v9 = vpop.eup %2459 }
 0x75d   :  { %v726_v16 = vmul.f32 %v2460_v9, %v2458_v5 }
 0x75f   :  { %2336 = vmatmul.mubr.msk.f32.vlgmr.msra.gmra.mxu1 %vm156_vm2, %v726_v16 }
 0x760   :  { %2344 = vmatpush3.xpose.msk.msra.mxu1 %vm156_vm2, %v883_v14  ;;  %2345 = vmatprep.mubr.msk.f32.mxu1 %vm2573_vm0, %v2572_v0 }
 0x761   :  { %2353 = vmatprep.subr.mxu1 %v2572_v0 }
 0x763   :  { %2346 = vmatmul.mubr.msk.f32.vlgmr.msra.gmra.mxu1 %vm156_vm2, %v881_v17 }
 0x764   :  { %2355 = vmatprep.mubr.msk.f32.mxu1 %vm2573_vm0, %v2572_v0 }
 0x81f   :  { %v799_v19 = vpop.f32.mrf.mxu1 }
 0x820   :  { %2341 = vmatmul.mubr.msk.f32.vlgmr.msra.gmra.mxu0 %vm156_vm2, %v799_v19 }
 0x821   :  { %v2337_v20 = vpop.f32.mrf.mxu1  ;;  %2350 = vmatprep.mubr.msk.f32.mxu0 %vm2573_vm0, %v2572_v0 }
 0x823   :  { %v954_v21 = vpop.f32.mrf.mxu1 }
 0x824   :  { %v955_v22 = vadd.f32 %v954_v21, %v2673_v15 }
 0x825   :  { %v2347_v23 = vpop.f32.mrf.mxu1 }
 0x826   :  { %v958_v24 = vsel %vm156_vm2, %v955_v22, -inf }
 0x827   :  { %959 = vmax.xlane.f32.xlu1 %v958_v24 }
 0x8b0   :  { %v960_v26 = vpop.xlane.xlu1 %959 }
 0x8b1   :  { %v961_v27 = vsub.f32 %v955_v22, %v960_v26 }
 0x8b3   :  { %v962_v28 = vmul.f32 1.442695, %v961_v27 }
 0x8b5   :  { %2461 = vpow2.f32 %v962_v28 }
 0x8c2   :  { %v2462_v29 = vpop.eup %2461 }
 0x8c3   :  { %v964_v30 = vsel %vm156_vm2, %v2462_v29, 0.0 }
 0x8c4   :  { %965 = vadd.xlane.f32.xlu0 %v964_v30 }
 0x8da   :  { %969 = vrot.lane.b32.xlu0 %v2655_v6, %s2585_s14  ;;  %v1125_v6 = vld [vmem:[#allocation3 + $0x8] sm:$0xff] }
 0x8e0   :  { %v874_v32 = vpop.f32.mrf.mxu0 }
 0x8e1   :  { %v878_v33 = vadd.f32 %v874_v32, %v803_v31 }
 0x8e2   :  { %v2342_v34 = vpop.f32.mrf.mxu0 }
 0x8e3   :  { %879 = vst.msk [vmem:[#allocation2] sm:$0xff] %vm77_vm1, %v878_v33 }
 0x8ea   :  { %v1045_v43 = vld [vmem:[#allocation2] sm:$0xff] }
 0x94d   :  { %v966_v35 = vpop.xlane.xlu0 %965 }
 0x94e   :  { %2463 = vrcp.f32 %v966_v35 }
 0x951   :  { %v970_v36 = vpop.permute.xlu0 %969 }
 0x952   :  { %2349 = vmatpush3.msra.mxu0 %v970_v36 }
 0x953   :  { %2358 = vmatprep.subr.mxu0 %v2572_v0 }
 0x95b   :  { %v2464_v37 = vpop.eup %2463 }
 0x95c   :  { %v968_v39 = vmul.f32 %v2464_v37, %v2462_v29 }
 0x95e   :  { %2351 = vmatmul.mubr.msk.f32.vlgmr.msra.gmra.mxu0 %vm156_vm2, %v968_v39 }
 0x95f   :  { %2359 = vmatpush3.msra.mxu0 %v2636_v1  ;;  %2366 = vmatprep.mubr.msk.f32.mxu0 %vm2573_vm0, %v2572_v0  ;;  %v2777_v1 = vld [vmem:[#allocation8 + $0x18] sm:$0xff] }
 0x960   :  { %2360 = vmatprep.subr.mxu0 %v2572_v0  ;;  %2354 = vmatpush3.msra.mxu1 %v2777_v1 }
 0x961   :  { %2361 = vmatpush3.msra.mxu0 %v2638_v2  ;;  %2369 = vmatprep.subr.mxu1 %v2572_v0 }
 0x962   :  { %2362 = vmatprep.subr.mxu0 %v2572_v0 }
 0x963   :  { %2363 = vmatpush3.msra.mxu0 %v2642_v3 }
 0x964   :  { %2364 = vmatprep.subr.mxu0 %v2572_v0 }
 0x965   :  { %2365 = vmatpush3.msra.mxu0 %v2646_v4 }
 0x966   :  { %2367 = vmatmul.mubr.msk.f32.vlgmr.msra.gmra.mxu0 %vm77_vm1, %v1125_v6  ;;  %2379 = vmatprep.subr.mxu0 %v2572_v0 }
 0x967   :  { %2380 = vmatpush3.msra.mxu0 %v2682_v25  ;;  %2381 = vmatprep.mubr.msk.f32.mxu0 %vm2573_vm0, %v2572_v0 }
 0x968   :  { %2389 = vmatprep.subr.mxu0 %v2572_v0 }
 0xa1e   :  { %v1041_v2 = vpop.f32.mrf.mxu0 }
 0xa1f   :  { %2356 = vmatmul.mubr.msk.f32.vlgmr.msra.gmra.mxu1 %vm156_vm2, %v1041_v2 }
 0xa20   :  { %v2352_v3 = vpop.f32.mrf.mxu0  ;;  %2371 = vmatprep.mubr.msk.f32.mxu1 %vm2573_vm0, %v2572_v0 }
 0xa26   :  { %v2784_v4 = vpop.f32.mrf.mxu0 }
 0xa27   :  { %1294 = vrot.lane.b32.xlu1 %v2784_v4, %s2574_s0  ;;  %1206 = vrot.lane.b32.xlu0 %v2784_v4, %s2575_s2  ;;  %v2794_v41 = vmul.f32 0.17677669, %v2784_v4 }
 0xa28   :  { %v2368_v25 = vpop.f32.mrf.mxu0 }
 0xa2b   :  { %1449 = vrot.lane.b32.xlu1 %v2784_v4, %s2576_s5 }
 0xa99   :  { %v1207_v40 = vpop.permute.xlu0 %1206  ;;  %v1295_v42 = vpop.permute.xlu1 %1294 }
 0xa9a   :  { %2370 = vmatpush3.xpose.msk.msra.mxu1 %vm156_vm2, %v1207_v40 }
 0xa9b   :  { %2374 = vmatprep.subr.mxu1 %v2572_v0 }
 0xa9d   :  { %2372 = vmatmul.mubr.msk.f32.vlgmr.msra.gmra.mxu1 %vm156_vm2, %v2794_v41 }
 0xa9e   :  { %2375 = vmatpush3.msra.mxu1 %v1295_v42  ;;  %2376 = vmatprep.mubr.msk.f32.mxu1 %vm2573_vm0, %v2572_v0 }
 0xa9f   :  { %2384 = vmatprep.subr.mxu1 %v2572_v0 }
 0xadf   :  { %v1116_v44 = vpop.f32.mrf.mxu1 }
 0xae0   :  { %v1120_v45 = vadd.f32 %v1116_v44, %v1045_v43 }
 0xae1   :  { %v2357_v46 = vpop.f32.mrf.mxu1 }
 0xae2   :  { %1121 = vst.msk [vmem:[#allocation2] sm:$0xff] %vm77_vm1, %v1120_v45 }
 0xae9   :  { %v1122_v47 = vld [vmem:[#allocation2] sm:$0xff] }
 0xaea   :  { %1203 = vst.msk [vmem:[#allocation2] sm:$0xff] %vm77_vm1, %v2703_v38  ;;  %1123 = vst.msk [vmem:[#allocation9] sm:$0xff] %vm77_vm1, %v1122_v47  ;;  %v1450_v38 = vpop.permute.xlu1 %1449 }
 0xaf1   :  { %v1370_v16 = vld [vmem:[#allocation2] sm:$0xff] }
 0xb5d   :  { %v1279_v48 = vpop.f32.mrf.mxu1 }
 0xb5e   :  { %v1280_v49 = vadd.f32 %v1279_v48, %v2673_v15 }
 0xb5f   :  { %v2373_v50 = vpop.f32.mrf.mxu1 }
 0xb60   :  { %v1283_v51 = vsel %vm156_vm2, %v1280_v49, -inf }
 0xb61   :  { %1284 = vmax.xlane.f32.xlu0 %v1283_v51 }
 0xb77   :  { %1536 = vrot.lane.b32.xlu0 %v2784_v4, %s2578_s6 }
 0xbea   :  { %v1285_v52 = vpop.xlane.xlu0 %1284 }
 0xbeb   :  { %v1286_v54 = vsub.f32 %v1280_v49, %v1285_v52 }
 0xbed   :  { %v1287_v55 = vmul.f32 1.442695, %v1286_v54 }
 0xbee   :  { %v1537_v63 = vpop.permute.xlu0 %1536 }
 0xbef   :  { %2465 = vpow2.f32 %v1287_v55 }
 0xbfc   :  { %v2466_v56 = vpop.eup %2465 }
 0xbfd   :  { %v1289_v57 = vsel %vm156_vm2, %v2466_v56, 0.0 }
 0xbfe   :  { %1290 = vadd.xlane.f32.xlu1 %v1289_v57 }
 0xc0f   :  { %1447 = vrot.lane.b32.xlu1 %v2794_v41, %s2579_s7 }
 0xc87   :  { %v1291_v58 = vpop.xlane.xlu1 %1290 }
 0xc88   :  { %2467 = vrcp.f32 %v1291_v58 }
 0xc8b   :  { %v1448_v61 = vpop.permute.xlu1 %1447 }
 0xc95   :  { %v2468_v59 = vpop.eup %2467 }
 0xc96   :  { %v1293_v60 = vmul.f32 %v2468_v59, %v2466_v56 }
 0xc98   :  { %2377 = vmatmul.mubr.msk.f32.vlgmr.msra.gmra.mxu1 %vm156_vm2, %v1293_v60 }
 0xc99   :  { %2385 = vmatpush3.xpose.msk.msra.mxu1 %vm156_vm2, %v1450_v38  ;;  %2386 = vmatprep.mubr.msk.f32.mxu1 %vm2573_vm0, %v2572_v0 }
 0xc9a   :  { %2394 = vmatprep.subr.mxu1 %v2572_v0 }
 0xc9c   :  { %2387 = vmatmul.mubr.msk.f32.vlgmr.msra.gmra.mxu1 %vm156_vm2, %v1448_v61 }
 0xc9d   :  { %2395 = vmatpush3.msra.mxu1 %v2721_v53  ;;  %2396 = vmatprep.mubr.msk.f32.mxu1 %vm2573_vm0, %v2572_v0 }
 0xc9e   :  { %2404 = vmatprep.subr.mxu1 %v2572_v0 }
 0xd58   :  { %v1366_v62 = vpop.f32.mrf.mxu1 }
 0xd59   :  { %2382 = vmatmul.mubr.msk.f32.vlgmr.msra.gmra.mxu0 %vm156_vm2, %v1366_v62 }
 0xd5a   :  { %2390 = vmatpush3.msra.mxu0 %v1537_v63  ;;  %v2378_v5 = vpop.f32.mrf.mxu1  ;;  %2391 = vmatprep.mubr.msk.f32.mxu0 %vm2573_vm0, %v2572_v0 }
 0xd5b   :  { %2399 = vmatprep.subr.mxu0 %v2572_v0 }
 0xd5c   :  { %v1521_v7 = vpop.f32.mrf.mxu1 }
 0xd5d   :  { %v1522_v8 = vadd.f32 %v1521_v7, %v2673_v15 }
 0xd5e   :  { %v2388_v53 = vpop.f32.mrf.mxu1 }
 0xd5f   :  { %v1525_v10 = vsel %vm156_vm2, %v1522_v8, -inf }
 0xd60   :  { %1526 = vmax.xlane.f32.xlu1 %v1525_v10 }
 0xd71   :  { %1778 = vrot.lane.b32.xlu1 %v2784_v4, %s2582_s3 }
 0xd75   :  { %1933 = vrot.lane.b32.xlu1 %v2784_v4, %s2583_s12 }
 0xde9   :  { %v1527_v11 = vpop.xlane.xlu1 %1526 }
 0xdea   :  { %v1528_v12 = vsub.f32 %v1522_v8, %v1527_v11 }
 0xdec   :  { %v1529_v13 = vmul.f32 1.442695, %v1528_v12 }
 0xded   :  { %v1779_v28 = vpop.permute.xlu1 %1778 }
 0xdee   :  { %2469 = vpow2.f32 %v1529_v13 }
 0xdf1   :  { %v1934_v25 = vpop.permute.xlu1 %1933 }
 0xdfb   :  { %v2470_v9 = vpop.eup %2469 }
 0xdfc   :  { %v1531_v14 = vsel %vm156_vm2, %v2470_v9, 0.0 }
 0xdfd   :  { %1532 = vadd.xlane.f32.xlu0 %v1531_v14 }
 0xe13   :  { %1691 = vrot.lane.b32.xlu0 %v2784_v4, %s2580_s10 }
 0xe17   :  { %1689 = vrot.lane.b32.xlu0 %v2794_v41, %s2581_s11 }
 0xe19   :  { %v1441_v17 = vpop.f32.mrf.mxu0 }
 0xe1a   :  { %v1445_v19 = vadd.f32 %v1441_v17, %v1370_v16 }
 0xe1b   :  { %v2383_v20 = vpop.f32.mrf.mxu0 }
 0xe1c   :  { %1446 = vst.msk [vmem:[#allocation2] sm:$0xff] %vm77_vm1, %v1445_v19 }
 0xe23   :  { %v1612_v39 = vld [vmem:[#allocation2] sm:$0xff] }
 0xe86   :  { %v1533_v21 = vpop.xlane.xlu0 %1532 }
 0xe87   :  { %2471 = vrcp.f32 %v1533_v21 }
 0xe8a   :  { %v1692_v23 = vpop.permute.xlu0 %1691 }
 0xe8e   :  { %v1690_v26 = vpop.permute.xlu0 %1689 }
 0xe94   :  { %v2472_v22 = vpop.eup %2471 }
 0xe95   :  { %v1535_v24 = vmul.f32 %v2472_v22, %v2470_v9 }
 0xe97   :  { %2392 = vmatmul.mubr.msk.f32.vlgmr.msra.gmra.mxu0 %vm156_vm2, %v1535_v24 }
 0xe98   :  { %2400 = vmatpush3.xpose.msk.msra.mxu0 %vm156_vm2, %v1692_v23  ;;  %2401 = vmatprep.mubr.msk.f32.mxu0 %vm2573_vm0, %v2572_v0 }
 0xe99   :  { %2409 = vmatprep.subr.mxu0 %v2572_v0 }
 0xe9b   :  { %2402 = vmatmul.mubr.msk.f32.vlgmr.msra.gmra.mxu0 %vm156_vm2, %v1690_v26 }
 0xe9c   :  { %2410 = vmatpush3.msra.mxu0 %v2747_v18  ;;  %2411 = vmatprep.mubr.msk.f32.mxu0 %vm2573_vm0, %v2572_v0 }
 0xe9d   :  { %2419 = vmatprep.subr.mxu0 %v2572_v0 }
 0xf57   :  { %v1608_v27 = vpop.f32.mrf.mxu0 }
 0xf58   :  { %2397 = vmatmul.mubr.msk.f32.vlgmr.msra.gmra.mxu1 %vm156_vm2, %v1608_v27 }
 0xf59   :  { %2405 = vmatpush3.msra.mxu1 %v1779_v28  ;;  %v2393_v29 = vpop.f32.mrf.mxu0  ;;  %2406 = vmatprep.mubr.msk.f32.mxu1 %vm2573_vm0, %v2572_v0 }
 0xf5a   :  { %2414 = vmatprep.subr.mxu1 %v2572_v0 }
 0xf5b   :  { %v1763_v30 = vpop.f32.mrf.mxu0 }
 0xf5c   :  { %v1764_v31 = vadd.f32 %v1763_v30, %v2673_v15 }
 0xf5d   :  { %v2403_v18 = vpop.f32.mrf.mxu0 }
 0xf5e   :  { %v1767_v32 = vsel %vm156_vm2, %v1764_v31, -inf }
 0xf5f   :  { %1768 = vmax.xlane.f32.xlu0 %v1767_v32 }
 0xfe8   :  { %v1769_v33 = vpop.xlane.xlu0 %1768 }
 0xfe9   :  { %v1770_v34 = vsub.f32 %v1764_v31, %v1769_v33 }
 0xfeb   :  { %v1771_v35 = vmul.f32 1.442695, %v1770_v34 }
 0xfed   :  { %2473 = vpow2.f32 %v1771_v35 }
 0xffa   :  { %v2474_v36 = vpop.eup %2473 }
 0xffb   :  { %v1773_v37 = vsel %vm156_vm2, %v2474_v36, 0.0 }
 0xffc   :  { %1774 = vadd.xlane.f32.xlu1 %v1773_v37 }
0x100d   :  { %1931 = vrot.lane.b32.xlu1 %v2794_v41, %s2584_s13 }
0x1018   :  { %v1683_v6 = vpop.f32.mrf.mxu1 }
0x1019   :  { %v1687_v2 = vadd.f32 %v1683_v6, %v1612_v39 }
0x101a   :  { %v2398_v3 = vpop.f32.mrf.mxu1 }
0x101b   :  { %1688 = vst.msk [vmem:[#allocation2] sm:$0xff] %vm77_vm1, %v1687_v2 }
0x1022   :  { %v1854_v55 = vld [vmem:[#allocation2] sm:$0xff] }
0x1085   :  { %v1775_v40 = vpop.xlane.xlu1 %1774 }
0x1086   :  { %2475 = vrcp.f32 %v1775_v40 }
0x1089   :  { %v1932_v41 = vpop.permute.xlu1 %1931 }
0x1093   :  { %v2476_v42 = vpop.eup %2475 }
0x1094   :  { %v1777_v43 = vmul.f32 %v2476_v42, %v2474_v36 }
0x1096   :  { %2407 = vmatmul.mubr.msk.f32.vlgmr.msra.gmra.mxu1 %vm156_vm2, %v1777_v43 }
0x1097   :  { %2415 = vmatpush3.xpose.msk.msra.mxu1 %vm156_vm2, %v1934_v25  ;;  %2416 = vmatprep.mubr.msk.f32.mxu1 %vm2573_vm0, %v2572_v0 }
0x1098   :  { %2424 = vmatprep.subr.mxu1 %v2572_v0 }
0x109a   :  { %2417 = vmatmul.mubr.msk.f32.vlgmr.msra.gmra.mxu1 %vm156_vm2, %v1932_v41 }
0x109b   :  { %2425 = vmatpush3.msra.mxu1 %v2777_v1  ;;  %2426 = vmatprep.mubr.msk.f32.mxu1 %vm2573_vm0, %v2572_v0 }
0x1156   :  { %v1850_v44 = vpop.f32.mrf.mxu1 }
0x1157   :  { %2412 = vmatmul.mubr.msk.f32.vlgmr.msra.gmra.mxu0 %vm156_vm2, %v1850_v44 }
0x1158   :  { %v2408_v45 = vpop.f32.mrf.mxu1  ;;  %2421 = vmatprep.mubr.msk.f32.mxu0 %vm2573_vm0, %v2572_v0 }
0x115a   :  { %v2005_v46 = vpop.f32.mrf.mxu1 }
0x115b   :  { %v2006_v47 = vadd.f32 %v2005_v46, %v2673_v15 }
0x115c   :  { %v2418_v48 = vpop.f32.mrf.mxu1 }
0x115d   :  { %v2009_v49 = vsel %vm156_vm2, %v2006_v47, -inf }
0x115e   :  { %2010 = vmax.xlane.f32.xlu1 %v2009_v49 }
0x11e7   :  { %v2011_v50 = vpop.xlane.xlu1 %2010 }
0x11e8   :  { %v2012_v51 = vsub.f32 %v2006_v47, %v2011_v50 }
0x11ea   :  { %v2013_v1 = vmul.f32 1.442695, %v2012_v51 }
0x11ec   :  { %2477 = vpow2.f32 %v2013_v1 }
0x11f9   :  { %v2478_v52 = vpop.eup %2477 }
0x11fa   :  { %v2015_v54 = vsel %vm156_vm2, %v2478_v52, 0.0 }
0x11fb   :  { %2016 = vadd.xlane.f32.xlu0 %v2015_v54 }
0x1211   :  { %2020 = vrot.lane.b32.xlu0 %v2784_v4, %s2585_s14 }
0x1217   :  { %v1925_v0 = vpop.f32.mrf.mxu0 }
0x1218   :  { %v1929_v56 = vadd.f32 %v1925_v0, %v1854_v55 }
0x1219   :  { %v2413_v57 = vpop.f32.mrf.mxu0 }
0x121a   :  { %1930 = vst.msk [vmem:[#allocation2] sm:$0xff] %vm77_vm1, %v1929_v56 }
0x1221   :  { %v2096_v62 = vld [vmem:[#allocation2] sm:$0xff] }
0x1284   :  { %v2017_v15 = vpop.xlane.xlu0 %2016 }
0x1285   :  { %2479 = vrcp.f32 %v2017_v15 }
0x1288   :  { %v2021_v38 = vpop.permute.xlu0 %2020 }
0x1289   :  { %2420 = vmatpush3.msra.mxu0 %v2021_v38 }
0x1292   :  { %v2480_v58 = vpop.eup %2479 }
0x1293   :  { %v2019_v59 = vmul.f32 %v2480_v58, %v2478_v52 }
0x1295   :  { %2422 = vmatmul.mubr.msk.f32.vlgmr.msra.gmra.mxu0 %vm156_vm2, %v2019_v59 }
0x1355   :  { %v2092_v60 = vpop.f32.mrf.mxu0 }
0x1356   :  { %2427 = vmatmul.mubr.msk.f32.vlgmr.msra.gmra.mxu1 %vm156_vm2, %v2092_v60 }
0x1357   :  { %v2423_v61 = vpop.f32.mrf.mxu0 }
0x1416   :  { %v2167_v4 = vpop.f32.mrf.mxu1 }
0x1417   :  { %v2171_v63 = vadd.f32 %v2167_v4, %v2096_v62 }
0x1418   :  { %v2428_v5 = vpop.f32.mrf.mxu1 }
0x1419   :  { %2172 = vst.msk [vmem:[#allocation2] sm:$0xff] %vm77_vm1, %v2171_v63 }
0x1420   :  { %v2173_v7 = vld [vmem:[#allocation2] sm:$0xff] }
0x1421   :  { %2175 = vst.msk [vmem:[#allocation9 + $0x8] sm:$0xff] %vm77_vm1, %v2173_v7 }
0x1422   :  { %2552 = shalt.err (!%p2549_p5)
}
0x1423   :  { %2187 = dma.vmem_to_hbm [thread:$0]  %s2182_s16, 256, %s2891_s4, [#allocation5], %s2569_s20, %s2569_s20, %s2570_s21  }
0x1424   :  { %2565 = dma.done.wait [#allocation5], 256  }
0x1425   :  { %2566 = vsyncadd [#allocation5], 4294967040 }
0x1426   :  { %2191 = vsyncpa [#allocation4], 1 }
0x1427   :  { %2192 = vsyncpa [#allocation7], 1 }
0x1428   :  { %2193 = vsyncpa [#allocation5], 1 }

// kernel: tpu_custom_call.1
= control target key start
LH: loop header
LB: loop body
LE: loop exit
PB: predicated region body
PF: predicated region fallthrough
CT: control target
= control target key end

     0   :  { %9 = vsyncpa [#allocation4], 0  ;;  %s2887_s0 = inlined_call_operand.hbm [shape: f32[2,8,32], index: 0, kind: input, shape index: {}]   ;;  %s2888_s1 = inlined_call_operand.hbm [shape: f32[32,96], index: 1, kind: input, shape index: {}]   ;;  %s2889_s2 = inlined_call_operand.hbm [shape: f32[32,32], index: 2, kind: input, shape index: {}]   ;;  %s2890_s3 = inlined_call_operand.vmem [shape: f32[1,32], index: 3, kind: input, shape index: {}]   ;;  %s2891_s4 = inlined_call_operand.hbm [shape: f32[2,8,32], index: 4, kind: output, shape index: {}]  }
   0x1   :  { %10 = vsyncpa [#allocation7], 0 }
   0x2   :  { %11 = vsyncpa [#allocation5], 0  ;;  %s2567_s15 = smov [#allocation6]   ;;  %s2568_s17 = smov [#allocation3]  }
   0x3   :  { %s29_s16 = sshll.u32 %s2567_s15, 4  ;;  %s17_s18 = sshll.u32 %s2568_s17, 4  ;;  %s30_s16 = int_to_ptr.vmem [resolvable:$true] %s29_s16  ;;  %s18_s18 = int_to_ptr.vmem [resolvable:$true] %s17_s18 }
   0x4   :  { %s2489_s19 = scalar_lea.vmem %s30_s16, 512  ;;  %p2494_p1 = scmp.lt.s32.totalorder %s30_s16, %s30_s16 }
   0x5   :  { %p2490_p0 = scmp.ne.s32.totalorder %s30_s16, %s2489_s19  ;;  %p2495_p2 = scmp.lt.s32.totalorder %s2489_s19, %s2489_s19 }
   0x7   :  { %p2496_p3 = por %p2495_p2, %p2494_p1 }
   0x9   :  { %p2497_p4 = pnand %p2496_p3, %p2490_p0 }
   0xb   :  { %2500 = shalt.err (!%p2497_p4)
}
   0xc   :  { %s2569_s20 = smov 128   ;;  %s2570_s21 = smov 8  }
   0xd   :  { %35 = dma.hbm_to_vmem [thread:$0]  %s2888_s1, 512, %s30_s16, [#allocation7], %s2569_s20, %s2569_s20, %s2570_s21  }
   0xe   :  { %s2509_s24 = scalar_lea.vmem %s18_s18, 256  ;;  %p2514_p6 = scmp.lt.s32.totalorder %s18_s18, %s18_s18 }
   0xf   :  { %p2510_p5 = scmp.ne.s32.totalorder %s18_s18, %s2509_s24  ;;  %p2515_p7 = scmp.lt.s32.totalorder %s2509_s24, %s2509_s24 }
  0x11   :  { %p2516_p8 = por %p2515_p7, %p2514_p6 }
  0x13   :  { %p2517_p9 = pnand %p2516_p8, %p2510_p5 }
  0x15   :  { %2520 = shalt.err (!%p2517_p9)
}
  0x16   :  { %23 = dma.hbm_to_vmem [thread:$0]  %s2887_s0, 256, %s18_s18, [#allocation4], %s2569_s20, %s2569_s20, %s2570_s21  }
  0x17   :  { %s2571_s27 = smov [#allocation8]  }
  0x18   :  { %s41_s28 = sshll.u32 %s2571_s27, 4  ;;  %s42_s28 = int_to_ptr.vmem [resolvable:$true] %s41_s28 }
  0x19   :  { %s2529_s29 = scalar_lea.vmem %s42_s28, 512  ;;  %p2534_p11 = scmp.lt.s32.totalorder %s42_s28, %s42_s28 }
  0x1a   :  { %p2530_p10 = scmp.ne.s32.totalorder %s42_s28, %s2529_s29  ;;  %p2535_p12 = scmp.lt.s32.totalorder %s2529_s29, %s2529_s29 }
  0x1c   :  { %p2536_p13 = por %p2535_p12, %p2534_p11 }
  0x1e   :  { %p2537_p0 = pnand %p2536_p13, %p2530_p10 }
  0x20   :  { %2540 = shalt.err (!%p2537_p0)
}
  0x21   :  { %47 = dma.hbm_to_vmem [thread:$0]  %s2889_s2, 512, %s42_s28, [#allocation7], %s2569_s20, %s2569_s20, %s2570_s21  }
  0x22   :  { %2561 = dma.done.wait [#allocation4], 256  }
  0x23   :  { %2562 = vsyncadd [#allocation4], 4294967040 }
  0x24   :  { %2563 = dma.done.wait [#allocation7], 1024  }
  0x25   :  { %2564 = vsyncadd [#allocation7], 4294966272  ;;  %v2572_v0 = vmov 0.0   ;;  %vm2573_vm0 = vmmov 0   ;;  %v2636_v1 = vld [vmem:[#allocation6 + $0x18] sm:$0xff]  ;;  %v2638_v2 = vld [vmem:[#allocation6 + $0x10] sm:$0xff]  ;;  %v59_v11 = vlaneseq }
  0x26   :  { %2287 = vmatprep.subr.mxu0 %v2572_v0  ;;  %2295 = vmatprep.mubr.msk.f32.mxu0 %vm2573_vm0, %v2572_v0  ;;  %v2642_v3 = vld [vmem:[#allocation6 + $0x8] sm:$0xff]  ;;  %v2646_v4 = vld [vmem:[#allocation6] sm:$0xff]  ;;  %v72_v5 = vld [vmem:[#allocation3] sm:$0xff]  ;;  %vm77_vm1 = vcmask 261120   ;;  %s2574_s0 = smov 64   ;;  %s2575_s2 = smov 96  }
  0x27   :  { %2298 = vmatprep.subr.mxu1 %v2572_v0  ;;  %2300 = vmatprep.mubr.msk.f32.mxu1 %vm2573_vm0, %v2572_v0  ;;  %s2576_s5 = smov 88   ;;  %vm156_vm2 = vcmask 64512   ;;  %v60_v12 = vshrl.u32 %v59_v11, 7  ;;  %v62_v13 = vand.u32 127, %v59_v11  ;;  %v2577_v14 = vmov -1e+30  }
  0x28   :  { %2288 = vmatpush3.msra.mxu0 %v2636_v1  ;;  %s2578_s6 = smov 56   ;;  %s2579_s7 = smov 120   ;;  %v2682_v25 = vld [vmem:[#allocation8] sm:$0xff]  ;;  %v2703_v38 = vld [vmem:[%s2890_s3] ss:$0 sm:$0xff] }
  0x29   :  { %2289 = vmatprep.subr.mxu0 %v2572_v0  ;;  %vm63_vm3 = vcmp.le.s32.totalorder %v62_v13, %v60_v12  ;;  %151 = vst.msk [vmem:[#allocation2] sm:$0xff] %vm77_vm1, %v2703_v38  ;;  %s2580_s10 = smov 80   ;;  %s2581_s11 = smov 112   ;;  %v2721_v53 = vld [vmem:[#allocation8 + $0x8] sm:$0xff] }
  0x2a   :  { %2290 = vmatpush3.msra.mxu0 %v2638_v2  ;;  %v2673_v15 = vsel %vm63_vm3, 0.0, %v2577_v14  ;;  %s2582_s3 = smov 48   ;;  %s2583_s12 = smov 72  }
  0x2b   :  { %2291 = vmatprep.subr.mxu0 %v2572_v0  ;;  %s2584_s13 = smov 104   ;;  %s2585_s14 = smov 40  }
  0x2c   :  { %2292 = vmatpush3.msra.mxu0 %v2642_v3  ;;  %s2586_s15 = smov [#allocation9]  }
  0x2d   :  { %2293 = vmatprep.subr.mxu0 %v2572_v0  ;;  %s2181_s16 = sshll.u32 %s2586_s15, 4  ;;  %s2182_s16 = int_to_ptr.vmem [resolvable:$true] %s2181_s16 }
  0x2e   :  { %2294 = vmatpush3.msra.mxu0 %v2646_v4  ;;  %s2541_s17 = scalar_lea.vmem %s2182_s16, 256  ;;  %p2546_p2 = scmp.lt.s32.totalorder %s2182_s16, %s2182_s16 }
  0x2f   :  { %2296 = vmatmul.mubr.msk.f32.vlgmr.msra.gmra.mxu0 %vm77_vm1, %v72_v5  ;;  %2308 = vmatprep.subr.mxu0 %v2572_v0  ;;  %p2542_p1 = scmp.ne.s32.totalorder %s2182_s16, %s2541_s17  ;;  %p2547_p3 = scmp.lt.s32.totalorder %s2541_s17, %s2541_s17 }
  0x30   :  { %2310 = vmatprep.mubr.msk.f32.mxu0 %vm2573_vm0, %v2572_v0  ;;  %2309 = vmatpush3.msra.mxu0 %v2682_v25  ;;  %v319_v44 = vld [vmem:[#allocation2] sm:$0xff] }
  0x31   :  { %2318 = vmatprep.subr.mxu0 %v2572_v0  ;;  %p2548_p4 = por %p2547_p3, %p2546_p2 }
  0x33   :  { %p2549_p5 = pnand %p2548_p4, %p2542_p1 }
  0xef   :  { %v2655_v6 = vpop.f32.mrf.mxu0 }
  0xf0   :  { %243 = vrot.lane.b32.xlu1 %v2655_v6, %s2574_s0  ;;  %154 = vrot.lane.b32.xlu0 %v2655_v6, %s2575_s2  ;;  %v2665_v9 = vmul.f32 0.17677669, %v2655_v6 }
  0xf1   :  { %v2297_v7 = vpop.f32.mrf.mxu0 }
  0xf4   :  { %398 = vrot.lane.b32.xlu1 %v2655_v6, %s2576_s5 }
 0x162   :  { %v155_v8 = vpop.permute.xlu0 %154  ;;  %v244_v10 = vpop.permute.xlu1 %243 }
 0x163   :  { %2299 = vmatpush3.xpose.msk.msra.mxu1 %vm156_vm2, %v155_v8 }
 0x164   :  { %2303 = vmatprep.subr.mxu1 %v2572_v0 }
 0x166   :  { %2301 = vmatmul.mubr.msk.f32.vlgmr.msra.gmra.mxu1 %vm156_vm2, %v2665_v9  ;;  %v399_v26 = vpop.permute.xlu1 %398 }
 0x167   :  { %2304 = vmatpush3.msra.mxu1 %v244_v10  ;;  %2305 = vmatprep.mubr.msk.f32.mxu1 %vm2573_vm0, %v2572_v0 }
 0x168   :  { %2313 = vmatprep.subr.mxu1 %v2572_v0 }
 0x226   :  { %v228_v16 = vpop.f32.mrf.mxu1 }
 0x227   :  { %v229_v17 = vadd.f32 %v228_v16, %v2673_v15 }
 0x228   :  { %v2302_v18 = vpop.f32.mrf.mxu1 }
 0x229   :  { %v232_v19 = vsel %vm156_vm2, %v229_v17, -inf  ;;  %v2747_v18 = vld [vmem:[#allocation8 + $0x10] sm:$0xff] }
 0x22a   :  { %233 = vmax.xlane.f32.xlu0 %v232_v19 }
 0x240   :  { %485 = vrot.lane.b32.xlu0 %v2655_v6, %s2578_s6 }
 0x2b3   :  { %v234_v20 = vpop.xlane.xlu0 %233 }
 0x2b4   :  { %v235_v21 = vsub.f32 %v229_v17, %v234_v20 }
 0x2b6   :  { %v236_v22 = vmul.f32 1.442695, %v235_v21 }
 0x2b7   :  { %v486_v32 = vpop.permute.xlu0 %485 }
 0x2b8   :  { %2449 = vpow2.f32 %v236_v22 }
 0x2c5   :  { %v2450_v23 = vpop.eup %2449 }
 0x2c6   :  { %v238_v24 = vsel %vm156_vm2, %v2450_v23, 0.0 }
 0x2c7   :  { %239 = vadd.xlane.f32.xlu1 %v238_v24 }
 0x2d8   :  { %396 = vrot.lane.b32.xlu1 %v2665_v9, %s2579_s7 }
 0x350   :  { %v240_v27 = vpop.xlane.xlu1 %239 }
 0x351   :  { %2451 = vrcp.f32 %v240_v27 }
 0x354   :  { %v397_v30 = vpop.permute.xlu1 %396 }
 0x35e   :  { %v2452_v28 = vpop.eup %2451 }
 0x35f   :  { %v242_v29 = vmul.f32 %v2452_v28, %v2450_v23 }
 0x361   :  { %2306 = vmatmul.mubr.msk.f32.vlgmr.msra.gmra.mxu1 %vm156_vm2, %v242_v29 }
 0x362   :  { %2314 = vmatpush3.xpose.msk.msra.mxu1 %vm156_vm2, %v399_v26  ;;  %2315 = vmatprep.mubr.msk.f32.mxu1 %vm2573_vm0, %v2572_v0 }
 0x363   :  { %2323 = vmatprep.subr.mxu1 %v2572_v0 }
 0x365   :  { %2316 = vmatmul.mubr.msk.f32.vlgmr.msra.gmra.mxu1 %vm156_vm2, %v397_v30 }
 0x366   :  { %2325 = vmatprep.mubr.msk.f32.mxu1 %vm2573_vm0, %v2572_v0  ;;  %2324 = vmatpush3.msra.mxu1 %v2721_v53 }
 0x367   :  { %2333 = vmatprep.subr.mxu1 %v2572_v0 }
 0x421   :  { %v315_v31 = vpop.f32.mrf.mxu1 }
 0x422   :  { %2311 = vmatmul.mubr.msk.f32.vlgmr.msra.gmra.mxu0 %vm156_vm2, %v315_v31 }
 0x423   :  { %2319 = vmatpush3.msra.mxu0 %v486_v32  ;;  %v2307_v33 = vpop.f32.mrf.mxu1  ;;  %2320 = vmatprep.mubr.msk.f32.mxu0 %vm2573_vm0, %v2572_v0 }
 0x424   :  { %2328 = vmatprep.subr.mxu0 %v2572_v0 }
 0x425   :  { %v470_v34 = vpop.f32.mrf.mxu1 }
 0x426   :  { %v471_v35 = vadd.f32 %v470_v34, %v2673_v15 }
 0x427   :  { %v2317_v36 = vpop.f32.mrf.mxu1 }
 0x428   :  { %v474_v37 = vsel %vm156_vm2, %v471_v35, -inf }
 0x429   :  { %475 = vmax.xlane.f32.xlu1 %v474_v37 }
 0x4b2   :  { %v476_v39 = vpop.xlane.xlu1 %475 }
 0x4b3   :  { %v477_v40 = vsub.f32 %v471_v35, %v476_v39 }
 0x4b5   :  { %v478_v41 = vmul.f32 1.442695, %v477_v40 }
 0x4b7   :  { %2453 = vpow2.f32 %v478_v41 }
 0x4c4   :  { %v2454_v42 = vpop.eup %2453 }
 0x4c5   :  { %v480_v43 = vsel %vm156_vm2, %v2454_v42, 0.0 }
 0x4c6   :  { %481 = vadd.xlane.f32.xlu0 %v480_v43 }
 0x4dc   :  { %640 = vrot.lane.b32.xlu0 %v2655_v6, %s2580_s10 }
 0x4e0   :  { %638 = vrot.lane.b32.xlu0 %v2665_v9, %s2581_s11 }
 0x4e2   :  { %v390_v45 = vpop.f32.mrf.mxu0 }
 0x4e3   :  { %v394_v46 = vadd.f32 %v390_v45, %v319_v44 }
 0x4e4   :  { %v2312_v47 = vpop.f32.mrf.mxu0 }
 0x4e5   :  { %395 = vst.msk [vmem:[#allocation2] sm:$0xff] %vm77_vm1, %v394_v46 }
 0x4ec   :  { %v561_v8 = vld [vmem:[#allocation2] sm:$0xff] }
 0x54f   :  { %v482_v48 = vpop.xlane.xlu0 %481 }
 0x550   :  { %2455 = vrcp.f32 %v482_v48 }
 0x553   :  { %v641_v50 = vpop.permute.xlu0 %640 }
 0x557   :  { %v639_v52 = vpop.permute.xlu0 %638 }
 0x55d   :  { %v2456_v49 = vpop.eup %2455 }
 0x55e   :  { %v484_v51 = vmul.f32 %v2456_v49, %v2454_v42 }
 0x560   :  { %2321 = vmatmul.mubr.msk.f32.vlgmr.msra.gmra.mxu0 %vm156_vm2, %v484_v51 }
 0x561   :  { %2329 = vmatpush3.xpose.msk.msra.mxu0 %vm156_vm2, %v641_v50  ;;  %2330 = vmatprep.mubr.msk.f32.mxu0 %vm2573_vm0, %v2572_v0 }
 0x562   :  { %2338 = vmatprep.subr.mxu0 %v2572_v0 }
 0x564   :  { %2331 = vmatmul.mubr.msk.f32.vlgmr.msra.gmra.mxu0 %vm156_vm2, %v639_v52 }
 0x565   :  { %2340 = vmatprep.mubr.msk.f32.mxu0 %vm2573_vm0, %v2572_v0  ;;  %2339 = vmatpush3.msra.mxu0 %v2747_v18 }
 0x566   :  { %2348 = vmatprep.subr.mxu0 %v2572_v0 }
 0x620   :  { %v557_v54 = vpop.f32.mrf.mxu0 }
 0x621   :  { %2326 = vmatmul.mubr.msk.f32.vlgmr.msra.gmra.mxu1 %vm156_vm2, %v557_v54 }
 0x622   :  { %v2322_v55 = vpop.f32.mrf.mxu0  ;;  %2335 = vmatprep.mubr.msk.f32.mxu1 %vm2573_vm0, %v2572_v0 }
 0x624   :  { %v712_v56 = vpop.f32.mrf.mxu0 }
 0x625   :  { %v713_v57 = vadd.f32 %v712_v56, %v2673_v15 }
 0x626   :  { %v2332_v58 = vpop.f32.mrf.mxu0 }
 0x627   :  { %v716_v59 = vsel %vm156_vm2, %v713_v57, -inf }
 0x628   :  { %717 = vmax.xlane.f32.xlu1 %v716_v59 }
 0x639   :  { %727 = vrot.lane.b32.xlu1 %v2655_v6, %s2582_s3 }
 0x63d   :  { %882 = vrot.lane.b32.xlu1 %v2655_v6, %s2583_s12 }
 0x641   :  { %880 = vrot.lane.b32.xlu1 %v2665_v9, %s2584_s13 }
 0x6b1   :  { %v718_v60 = vpop.xlane.xlu1 %717 }
 0x6b2   :  { %v719_v61 = vsub.f32 %v713_v57, %v718_v60 }
 0x6b4   :  { %v720_v62 = vmul.f32 1.442695, %v719_v61 }
 0x6b5   :  { %v728_v63 = vpop.permute.xlu1 %727 }
 0x6b6   :  { %2457 = vpow2.f32 %v720_v62  ;;  %2334 = vmatpush3.msra.mxu1 %v728_v63 }
 0x6b7   :  { %2343 = vmatprep.subr.mxu1 %v2572_v0 }
 0x6b9   :  { %v883_v14 = vpop.permute.xlu1 %882 }
 0x6bd   :  { %v881_v17 = vpop.permute.xlu1 %880 }
 0x6c3   :  { %v2458_v5 = vpop.eup %2457 }
 0x6c4   :  { %v722_v7 = vsel %vm156_vm2, %v2458_v5, 0.0 }
 0x6c5   :  { %723 = vadd.xlane.f32.xlu0 %v722_v7 }
 0x6e1   :  { %v632_v10 = vpop.f32.mrf.mxu1 }
 0x6e2   :  { %v636_v11 = vadd.f32 %v632_v10, %v561_v8 }
 0x6e3   :  { %v2327_v12 = vpop.f32.mrf.mxu1 }
 0x6e4   :  { %637 = vst.msk [vmem:[#allocation2] sm:$0xff] %vm77_vm1, %v636_v11 }
 0x6eb   :  { %v803_v31 = vld [vmem:[#allocation2] sm:$0xff] }
 0x74e   :  { %v724_v13 = vpop.xlane.xlu0 %723 }
 0x74f   :  { %2459 = vrcp.f32 %v724_v13 }
 0x75c   :  { %v2460_v9 = vpop.eup %2459 }
 0x75d   :  { %v726_v16 = vmul.f32 %v2460_v9, %v2458_v5 }
 0x75f   :  { %2336 = vmatmul.mubr.msk.f32.vlgmr.msra.gmra.mxu1 %vm156_vm2, %v726_v16 }
 0x760   :  { %2344 = vmatpush3.xpose.msk.msra.mxu1 %vm156_vm2, %v883_v14  ;;  %2345 = vmatprep.mubr.msk.f32.mxu1 %vm2573_vm0, %v2572_v0 }
 0x761   :  { %2353 = vmatprep.subr.mxu1 %v2572_v0 }
 0x763   :  { %2346 = vmatmul.mubr.msk.f32.vlgmr.msra.gmra.mxu1 %vm156_vm2, %v881_v17 }
 0x764   :  { %2355 = vmatprep.mubr.msk.f32.mxu1 %vm2573_vm0, %v2572_v0 }
 0x81f   :  { %v799_v19 = vpop.f32.mrf.mxu1 }
 0x820   :  { %2341 = vmatmul.mubr.msk.f32.vlgmr.msra.gmra.mxu0 %vm156_vm2, %v799_v19 }
 0x821   :  { %v2337_v20 = vpop.f32.mrf.mxu1  ;;  %2350 = vmatprep.mubr.msk.f32.mxu0 %vm2573_vm0, %v2572_v0 }
 0x823   :  { %v954_v21 = vpop.f32.mrf.mxu1 }
 0x824   :  { %v955_v22 = vadd.f32 %v954_v21, %v2673_v15 }
 0x825   :  { %v2347_v23 = vpop.f32.mrf.mxu1 }
 0x826   :  { %v958_v24 = vsel %vm156_vm2, %v955_v22, -inf }
 0x827   :  { %959 = vmax.xlane.f32.xlu1 %v958_v24 }
 0x8b0   :  { %v960_v26 = vpop.xlane.xlu1 %959 }
 0x8b1   :  { %v961_v27 = vsub.f32 %v955_v22, %v960_v26 }
 0x8b3   :  { %v962_v28 = vmul.f32 1.442695, %v961_v27 }
 0x8b5   :  { %2461 = vpow2.f32 %v962_v28 }
 0x8c2   :  { %v2462_v29 = vpop.eup %2461 }
 0x8c3   :  { %v964_v30 = vsel %vm156_vm2, %v2462_v29, 0.0 }
 0x8c4   :  { %965 = vadd.xlane.f32.xlu0 %v964_v30 }
 0x8da   :  { %969 = vrot.lane.b32.xlu0 %v2655_v6, %s2585_s14  ;;  %v1125_v6 = vld [vmem:[#allocation3 + $0x8] sm:$0xff] }
 0x8e0   :  { %v874_v32 = vpop.f32.mrf.mxu0 }
 0x8e1   :  { %v878_v33 = vadd.f32 %v874_v32, %v803_v31 }
 0x8e2   :  { %v2342_v34 = vpop.f32.mrf.mxu0 }
 0x8e3   :  { %879 = vst.msk [vmem:[#allocation2] sm:$0xff] %vm77_vm1, %v878_v33 }
 0x8ea   :  { %v1045_v43 = vld [vmem:[#allocation2] sm:$0xff] }
 0x94d   :  { %v966_v35 = vpop.xlane.xlu0 %965 }
 0x94e   :  { %2463 = vrcp.f32 %v966_v35 }
 0x951   :  { %v970_v36 = vpop.permute.xlu0 %969 }
 0x952   :  { %2349 = vmatpush3.msra.mxu0 %v970_v36 }
 0x953   :  { %2358 = vmatprep.subr.mxu0 %v2572_v0 }
 0x95b   :  { %v2464_v37 = vpop.eup %2463 }
 0x95c   :  { %v968_v39 = vmul.f32 %v2464_v37, %v2462_v29 }
 0x95e   :  { %2351 = vmatmul.mubr.msk.f32.vlgmr.msra.gmra.mxu0 %vm156_vm2, %v968_v39 }
 0x95f   :  { %2359 = vmatpush3.msra.mxu0 %v2636_v1  ;;  %2366 = vmatprep.mubr.msk.f32.mxu0 %vm2573_vm0, %v2572_v0  ;;  %v2777_v1 = vld [vmem:[#allocation8 + $0x18] sm:$0xff] }
 0x960   :  { %2360 = vmatprep.subr.mxu0 %v2572_v0  ;;  %2354 = vmatpush3.msra.mxu1 %v2777_v1 }
 0x961   :  { %2361 = vmatpush3.msra.mxu0 %v2638_v2  ;;  %2369 = vmatprep.subr.mxu1 %v2572_v0 }
 0x962   :  { %2362 = vmatprep.subr.mxu0 %v2572_v0 }
 0x963   :  { %2363 = vmatpush3.msra.mxu0 %v2642_v3 }
 0x964   :  { %2364 = vmatprep.subr.mxu0 %v2572_v0 }
 0x965   :  { %2365 = vmatpush3.msra.mxu0 %v2646_v4 }
 0x966   :  { %2367 = vmatmul.mubr.msk.f32.vlgmr.msra.gmra.mxu0 %vm77_vm1, %v1125_v6  ;;  %2379 = vmatprep.subr.mxu0 %v2572_v0 }
 0x967   :  { %2380 = vmatpush3.msra.mxu0 %v2682_v25  ;;  %2381 = vmatprep.mubr.msk.f32.mxu0 %vm2573_vm0, %v2572_v0 }
 0x968   :  { %2389 = vmatprep.subr.mxu0 %v2572_v0 }
 0xa1e   :  { %v1041_v2 = vpop.f32.mrf.mxu0 }
 0xa1f   :  { %2356 = vmatmul.mubr.msk.f32.vlgmr.msra.gmra.mxu1 %vm156_vm2, %v1041_v2 }
 0xa20   :  { %v2352_v3 = vpop.f32.mrf.mxu0  ;;  %2371 = vmatprep.mubr.msk.f32.mxu1 %vm2573_vm0, %v2572_v0 }
 0xa26   :  { %v2784_v4 = vpop.f32.mrf.mxu0 }
 0xa27   :  { %1294 = vrot.lane.b32.xlu1 %v2784_v4, %s2574_s0  ;;  %1206 = vrot.lane.b32.xlu0 %v2784_v4, %s2575_s2  ;;  %v2794_v41 = vmul.f32 0.17677669, %v2784_v4 }
 0xa28   :  { %v2368_v25 = vpop.f32.mrf.mxu0 }
 0xa2b   :  { %1449 = vrot.lane.b32.xlu1 %v2784_v4, %s2576_s5 }
 0xa99   :  { %v1207_v40 = vpop.permute.xlu0 %1206  ;;  %v1295_v42 = vpop.permute.xlu1 %1294 }
 0xa9a   :  { %2370 = vmatpush3.xpose.msk.msra.mxu1 %vm156_vm2, %v1207_v40 }
 0xa9b   :  { %2374 = vmatprep.subr.mxu1 %v2572_v0 }
 0xa9d   :  { %2372 = vmatmul.mubr.msk.f32.vlgmr.msra.gmra.mxu1 %vm156_vm2, %v2794_v41 }
 0xa9e   :  { %2375 = vmatpush3.msra.mxu1 %v1295_v42  ;;  %2376 = vmatprep.mubr.msk.f32.mxu1 %vm2573_vm0, %v2572_v0 }
 0xa9f   :  { %2384 = vmatprep.subr.mxu1 %v2572_v0 }
 0xadf   :  { %v1116_v44 = vpop.f32.mrf.mxu1 }
 0xae0   :  { %v1120_v45 = vadd.f32 %v1116_v44, %v1045_v43 }
 0xae1   :  { %v2357_v46 = vpop.f32.mrf.mxu1 }
 0xae2   :  { %1121 = vst.msk [vmem:[#allocation2] sm:$0xff] %vm77_vm1, %v1120_v45 }
 0xae9   :  { %v1122_v47 = vld [vmem:[#allocation2] sm:$0xff] }
 0xaea   :  { %1203 = vst.msk [vmem:[#allocation2] sm:$0xff] %vm77_vm1, %v2703_v38  ;;  %1123 = vst.msk [vmem:[#allocation9] sm:$0xff] %vm77_vm1, %v1122_v47  ;;  %v1450_v38 = vpop.permute.xlu1 %1449 }
 0xaf1   :  { %v1370_v16 = vld [vmem:[#allocation2] sm:$0xff] }
 0xb5d   :  { %v1279_v48 = vpop.f32.mrf.mxu1 }
 0xb5e   :  { %v1280_v49 = vadd.f32 %v1279_v48, %v2673_v15 }
 0xb5f   :  { %v2373_v50 = vpop.f32.mrf.mxu1 }
 0xb60   :  { %v1283_v51 = vsel %vm156_vm2, %v1280_v49, -inf }
 0xb61   :  { %1284 = vmax.xlane.f32.xlu0 %v1283_v51 }
 0xb77   :  { %1536 = vrot.lane.b32.xlu0 %v2784_v4, %s2578_s6 }
 0xbea   :  { %v1285_v52 = vpop.xlane.xlu0 %1284 }
 0xbeb   :  { %v1286_v54 = vsub.f32 %v1280_v49, %v1285_v52 }
 0xbed   :  { %v1287_v55 = vmul.f32 1.442695, %v1286_v54 }
 0xbee   :  { %v1537_v63 = vpop.permute.xlu0 %1536 }
 0xbef   :  { %2465 = vpow2.f32 %v1287_v55 }
 0xbfc   :  { %v2466_v56 = vpop.eup %2465 }
 0xbfd   :  { %v1289_v57 = vsel %vm156_vm2, %v2466_v56, 0.0 }
 0xbfe   :  { %1290 = vadd.xlane.f32.xlu1 %v1289_v57 }
 0xc0f   :  { %1447 = vrot.lane.b32.xlu1 %v2794_v41, %s2579_s7 }
 0xc87   :  { %v1291_v58 = vpop.xlane.xlu1 %1290 }
 0xc88   :  { %2467 = vrcp.f32 %v1291_v58 }
 0xc8b   :  { %v1448_v61 = vpop.permute.xlu1 %1447 }
 0xc95   :  { %v2468_v59 = vpop.eup %2467 }
 0xc96   :  { %v1293_v60 = vmul.f32 %v2468_v59, %v2466_v56 }
 0xc98   :  { %2377 = vmatmul.mubr.msk.f32.vlgmr.msra.gmra.mxu1 %vm156_vm2, %v1293_v60 }
 0xc99   :  { %2385 = vmatpush3.xpose.msk.msra.mxu1 %vm156_vm2, %v1450_v38  ;;  %2386 = vmatprep.mubr.msk.f32.mxu1 %vm2573_vm0, %v2572_v0 }
 0xc9a   :  { %2394 = vmatprep.subr.mxu1 %v2572_v0 }
 0xc9c   :  { %2387 = vmatmul.mubr.msk.f32.vlgmr.msra.gmra.mxu1 %vm156_vm2, %v1448_v61 }
 0xc9d   :  { %2395 = vmatpush3.msra.mxu1 %v2721_v53  ;;  %2396 = vmatprep.mubr.msk.f32.mxu1 %vm2573_vm0, %v2572_v0 }
 0xc9e   :  { %2404 = vmatprep.subr.mxu1 %v2572_v0 }
 0xd58   :  { %v1366_v62 = vpop.f32.mrf.mxu1 }
 0xd59   :  { %2382 = vmatmul.mubr.msk.f32.vlgmr.msra.gmra.mxu0 %vm156_vm2, %v1366_v62 }
 0xd5a   :  { %2390 = vmatpush3.msra.mxu0 %v1537_v63  ;;  %v2378_v5 = vpop.f32.mrf.mxu1  ;;  %2391 = vmatprep.mubr.msk.f32.mxu0 %vm2573_vm0, %v2572_v0 }
 0xd5b   :  { %2399 = vmatprep.subr.mxu0 %v2572_v0 }
 0xd5c   :  { %v1521_v7 = vpop.f32.mrf.mxu1 }
 0xd5d   :  { %v1522_v8 = vadd.f32 %v1521_v7, %v2673_v15 }
 0xd5e   :  { %v2388_v53 = vpop.f32.mrf.mxu1 }
 0xd5f   :  { %v1525_v10 = vsel %vm156_vm2, %v1522_v8, -inf }
 0xd60   :  { %1526 = vmax.xlane.f32.xlu1 %v1525_v10 }
 0xd71   :  { %1778 = vrot.lane.b32.xlu1 %v2784_v4, %s2582_s3 }
 0xd75   :  { %1933 = vrot.lane.b32.xlu1 %v2784_v4, %s2583_s12 }
 0xde9   :  { %v1527_v11 = vpop.xlane.xlu1 %1526 }
 0xdea   :  { %v1528_v12 = vsub.f32 %v1522_v8, %v1527_v11 }
 0xdec   :  { %v1529_v13 = vmul.f32 1.442695, %v1528_v12 }
 0xded   :  { %v1779_v28 = vpop.permute.xlu1 %1778 }
 0xdee   :  { %2469 = vpow2.f32 %v1529_v13 }
 0xdf1   :  { %v1934_v25 = vpop.permute.xlu1 %1933 }
 0xdfb   :  { %v2470_v9 = vpop.eup %2469 }
 0xdfc   :  { %v1531_v14 = vsel %vm156_vm2, %v2470_v9, 0.0 }
 0xdfd   :  { %1532 = vadd.xlane.f32.xlu0 %v1531_v14 }
 0xe13   :  { %1691 = vrot.lane.b32.xlu0 %v2784_v4, %s2580_s10 }
 0xe17   :  { %1689 = vrot.lane.b32.xlu0 %v2794_v41, %s2581_s11 }
 0xe19   :  { %v1441_v17 = vpop.f32.mrf.mxu0 }
 0xe1a   :  { %v1445_v19 = vadd.f32 %v1441_v17, %v1370_v16 }
 0xe1b   :  { %v2383_v20 = vpop.f32.mrf.mxu0 }
 0xe1c   :  { %1446 = vst.msk [vmem:[#allocation2] sm:$0xff] %vm77_vm1, %v1445_v19 }
 0xe23   :  { %v1612_v39 = vld [vmem:[#allocation2] sm:$0xff] }
 0xe86   :  { %v1533_v21 = vpop.xlane.xlu0 %1532 }
 0xe87   :  { %2471 = vrcp.f32 %v1533_v21 }
 0xe8a   :  { %v1692_v23 = vpop.permute.xlu0 %1691 }
 0xe8e   :  { %v1690_v26 = vpop.permute.xlu0 %1689 }
 0xe94   :  { %v2472_v22 = vpop.eup %2471 }
 0xe95   :  { %v1535_v24 = vmul.f32 %v2472_v22, %v2470_v9 }
 0xe97   :  { %2392 = vmatmul.mubr.msk.f32.vlgmr.msra.gmra.mxu0 %vm156_vm2, %v1535_v24 }
 0xe98   :  { %2400 = vmatpush3.xpose.msk.msra.mxu0 %vm156_vm2, %v1692_v23  ;;  %2401 = vmatprep.mubr.msk.f32.mxu0 %vm2573_vm0, %v2572_v0 }
 0xe99   :  { %2409 = vmatprep.subr.mxu0 %v2572_v0 }
 0xe9b   :  { %2402 = vmatmul.mubr.msk.f32.vlgmr.msra.gmra.mxu0 %vm156_vm2, %v1690_v26 }
 0xe9c   :  { %2410 = vmatpush3.msra.mxu0 %v2747_v18  ;;  %2411 = vmatprep.mubr.msk.f32.mxu0 %vm2573_vm0, %v2572_v0 }
 0xe9d   :  { %2419 = vmatprep.subr.mxu0 %v2572_v0 }
 0xf57   :  { %v1608_v27 = vpop.f32.mrf.mxu0 }
 0xf58   :  { %2397 = vmatmul.mubr.msk.f32.vlgmr.msra.gmra.mxu1 %vm156_vm2, %v1608_v27 }
 0xf59   :  { %2405 = vmatpush3.msra.mxu1 %v1779_v28  ;;  %v2393_v29 = vpop.f32.mrf.mxu0  ;;  %2406 = vmatprep.mubr.msk.f32.mxu1 %vm2573_vm0, %v2572_v0 }
 0xf5a   :  { %2414 = vmatprep.subr.mxu1 %v2572_v0 }
 0xf5b   :  { %v1763_v30 = vpop.f32.mrf.mxu0 }
 0xf5c   :  { %v1764_v31 = vadd.f32 %v1763_v30, %v2673_v15 }
 0xf5d   :  { %v2403_v18 = vpop.f32.mrf.mxu0 }
 0xf5e   :  { %v1767_v32 = vsel %vm156_vm2, %v1764_v31, -inf }
 0xf5f   :  { %1768 = vmax.xlane.f32.xlu0 %v1767_v32 }
 0xfe8   :  { %v1769_v33 = vpop.xlane.xlu0 %1768 }
 0xfe9   :  { %v1770_v34 = vsub.f32 %v1764_v31, %v1769_v33 }
 0xfeb   :  { %v1771_v35 = vmul.f32 1.442695, %v1770_v34 }
 0xfed   :  { %2473 = vpow2.f32 %v1771_v35 }
 0xffa   :  { %v2474_v36 = vpop.eup %2473 }
 0xffb   :  { %v1773_v37 = vsel %vm156_vm2, %v2474_v36, 0.0 }
 0xffc   :  { %1774 = vadd.xlane.f32.xlu1 %v1773_v37 }
0x100d   :  { %1931 = vrot.lane.b32.xlu1 %v2794_v41, %s2584_s13 }
0x1018   :  { %v1683_v6 = vpop.f32.mrf.mxu1 }
0x1019   :  { %v1687_v2 = vadd.f32 %v1683_v6, %v1612_v39 }
0x101a   :  { %v2398_v3 = vpop.f32.mrf.mxu1 }
0x101b   :  { %1688 = vst.msk [vmem:[#allocation2] sm:$0xff] %vm77_vm1, %v1687_v2 }
0x1022   :  { %v1854_v55 = vld [vmem:[#allocation2] sm:$0xff] }
0x1085   :  { %v1775_v40 = vpop.xlane.xlu1 %1774 }
0x1086   :  { %2475 = vrcp.f32 %v1775_v40 }
0x1089   :  { %v1932_v41 = vpop.permute.xlu1 %1931 }
0x1093   :  { %v2476_v42 = vpop.eup %2475 }
0x1094   :  { %v1777_v43 = vmul.f32 %v2476_v42, %v2474_v36 }
0x1096   :  { %2407 = vmatmul.mubr.msk.f32.vlgmr.msra.gmra.mxu1 %vm156_vm2, %v1777_v43 }
0x1097   :  { %2415 = vmatpush3.xpose.msk.msra.mxu1 %vm156_vm2, %v1934_v25  ;;  %2416 = vmatprep.mubr.msk.f32.mxu1 %vm2573_vm0, %v2572_v0 }
0x1098   :  { %2424 = vmatprep.subr.mxu1 %v2572_v0 }
0x109a   :  { %2417 = vmatmul.mubr.msk.f32.vlgmr.msra.gmra.mxu1 %vm156_vm2, %v1932_v41 }
0x109b   :  { %2425 = vmatpush3.msra.mxu1 %v2777_v1  ;;  %2426 = vmatprep.mubr.msk.f32.mxu1 %vm2573_vm0, %v2572_v0 }
0x1156   :  { %v1850_v44 = vpop.f32.mrf.mxu1 }
0x1157   :  { %2412 = vmatmul.mubr.msk.f32.vlgmr.msra.gmra.mxu0 %vm156_vm2, %v1850_v44 }
0x1158   :  { %v2408_v45 = vpop.f32.mrf.mxu1  ;;  %2421 = vmatprep.mubr.msk.f32.mxu0 %vm2573_vm0, %v2572_v0 }
0x115a   :  { %v2005_v46 = vpop.f32.mrf.mxu1 }
0x115b   :  { %v2006_v47 = vadd.f32 %v2005_v46, %v2673_v15 }
0x115c   :  { %v2418_v48 = vpop.f32.mrf.mxu1 }
0x115d   :  { %v2009_v49 = vsel %vm156_vm2, %v2006_v47, -inf }
0x115e   :  { %2010 = vmax.xlane.f32.xlu1 %v2009_v49 }
0x11e7   :  { %v2011_v50 = vpop.xlane.xlu1 %2010 }
0x11e8   :  { %v2012_v51 = vsub.f32 %v2006_v47, %v2011_v50 }
0x11ea   :  { %v2013_v1 = vmul.f32 1.442695, %v2012_v51 }
0x11ec   :  { %2477 = vpow2.f32 %v2013_v1 }
0x11f9   :  { %v2478_v52 = vpop.eup %2477 }
0x11fa   :  { %v2015_v54 = vsel %vm156_vm2, %v2478_v52, 0.0 }
0x11fb   :  { %2016 = vadd.xlane.f32.xlu0 %v2015_v54 }
0x1211   :  { %2020 = vrot.lane.b32.xlu0 %v2784_v4, %s2585_s14 }
0x1217   :  { %v1925_v0 = vpop.f32.mrf.mxu0 }
0x1218   :  { %v1929_v56 = vadd.f32 %v1925_v0, %v1854_v55 }
0x1219   :  { %v2413_v57 = vpop.f32.mrf.mxu0 }
0x121a   :  { %1930 = vst.msk [vmem:[#allocation2] sm:$0xff] %vm77_vm1, %v1929_v56 }
0x1221   :  { %v2096_v62 = vld [vmem:[#allocation2] sm:$0xff] }
0x1284   :  { %v2017_v15 = vpop.xlane.xlu0 %2016 }
0x1285   :  { %2479 = vrcp.f32 %v2017_v15 }
0x1288   :  { %v2021_v38 = vpop.permute.xlu0 %2020 }
0x1289   :  { %2420 = vmatpush3.msra.mxu0 %v2021_v38 }
0x1292   :  { %v2480_v58 = vpop.eup %2479 }
0x1293   :  { %v2019_v59 = vmul.f32 %v2480_v58, %v2478_v52 }
0x1295   :  { %2422 = vmatmul.mubr.msk.f32.vlgmr.msra.gmra.mxu0 %vm156_vm2, %v2019_v59 }
0x1355   :  { %v2092_v60 = vpop.f32.mrf.mxu0 }
0x1356   :  { %2427 = vmatmul.mubr.msk.f32.vlgmr.msra.gmra.mxu1 %vm156_vm2, %v2092_v60 }
0x1357   :  { %v2423_v61 = vpop.f32.mrf.mxu0 }
0x1416   :  { %v2167_v4 = vpop.f32.mrf.mxu1 }
0x1417   :  { %v2171_v63 = vadd.f32 %v2167_v4, %v2096_v62 }
0x1418   :  { %v2428_v5 = vpop.f32.mrf.mxu1 }
0x1419   :  { %2172 = vst.msk [vmem:[#allocation2] sm:$0xff] %vm77_vm1, %v2171_v63 }
0x1420   :  { %v2173_v7 = vld [vmem:[#allocation2] sm:$0xff] }
0x1421   :  { %2175 = vst.msk [vmem:[#allocation9 + $0x8] sm:$0xff] %vm77_vm1, %v2173_v7 }
0x1422   :  { %2552 = shalt.err (!%p2549_p5)
}
0x1423   :  { %2187 = dma.vmem_to_hbm [thread:$0]  %s2182_s16, 256, %s2891_s4, [#allocation5], %s2569_s20, %s2569_s20, %s2570_s21  }
0x1424   :  { %2565 = dma.done.wait [#allocation5], 256  }
0x1425   :  { %2566 = vsyncadd [#allocation5], 4294967040 }
0x1426   :  { %2191 = vsyncpa [#allocation4], 1 }
0x1427   :  { %2192 = vsyncpa [#allocation7], 1 }
0x1428   :  { %2193 = vsyncpa [#allocation5], 1 }

</bundles_post_ra>
